<compile_context>
chip_gen: v7x
topology: tpu7x:2x2x1
jax: 0.10.0
libtpu: 0.0.40
codegen_flags: <defaults>
</compile_context>

<pallas_src>
import functools

import jax
import jax.numpy as jnp
from jax.experimental import pallas as pl
from jax.experimental.pallas import tpu as pltpu

IN_DIM = 512
EPS = 1e-5  # nn.LayerNorm default


def _layernorm(h, gamma, beta):
    """LayerNorm over the last dim of a (tm, H) f32 tile."""
    inv_h = 1.0 / h.shape[-1]
    mean = jnp.sum(h, axis=-1, keepdims=True) * inv_h
    centered = h - mean
    var = jnp.sum(centered * centered, axis=-1, keepdims=True) * inv_h
    return centered * jax.lax.rsqrt(var + EPS) * gamma + beta


def layernorm_net_kernel(
    x_ref,
    w1_ref, b1_ref, g1_ref, be1_ref,
    w2_ref, b2_ref, g2_ref, be2_ref,
    w4_ref, b4_ref, g4_ref, be4_ref,
    w5_ref, b5_ref, g5_ref, be5_ref,
    w3_ref, b3_ref,
    o_ref,
):
    # Weights arrive pre-cast to bf16 (wrapper does the one-time cast); feed
    # the MXU bf16 x bf16 with f32 accumulation. Everything else stays f32.
    mxu_dtype = w1_ref.dtype

    x = x_ref[...].astype(mxu_dtype)

    # block 1: fc1 -> ln1 -> (dropout=id) -> relu
    h = jnp.dot(x, w1_ref[...], preferred_element_type=jnp.float32) + b1_ref[...]
    h = _layernorm(h, g1_ref[...], be1_ref[...])
    h = jnp.maximum(h, 0.0)

    # block 2: fc2 -> ln2 -> relu
    h = jnp.dot(h.astype(mxu_dtype), w2_ref[...],
                preferred_element_type=jnp.float32) + b2_ref[...]
    h = _layernorm(h, g2_ref[...], be2_ref[...])
    h = jnp.maximum(h, 0.0)

    # block 3: fc4 -> ln4 -> relu
    h = jnp.dot(h.astype(mxu_dtype), w4_ref[...],
                preferred_element_type=jnp.float32) + b4_ref[...]
    h = _layernorm(h, g4_ref[...], be4_ref[...])
    h = jnp.maximum(h, 0.0)

    # block 4: fc5 -> ln5 -> relu
    h = jnp.dot(h.astype(mxu_dtype), w5_ref[...],
                preferred_element_type=jnp.float32) + b5_ref[...]
    h = _layernorm(h, g5_ref[...], be5_ref[...])
    h = jnp.maximum(h, 0.0)

    # head: fc3
    y = jnp.dot(h.astype(mxu_dtype), w3_ref[...],
                preferred_element_type=jnp.float32) + b3_ref[...]

    o_ref[...] = y.astype(o_ref.dtype)


@functools.partial(jax.jit, static_argnames=("tm",))
def layernorm_net(x, params, *, tm=256):
    """x: [N, 512] -> [N, out_dim].

    Grid tiles the batch (one "parallel" axis -> megacore-shardable on v7x);
    weights / biases / LN params are untiled and resident in VMEM.
    tm: batch tile. Prefer multiples of 256 on v6e/v7x (with N/tm >= 2 on
    v7x so both TensorCores get work) and 128-256 on v5e.
    """
    N, in_dim = x.shape
    assert in_dim == IN_DIM
    out_dim = params["w3"].shape[1]

    tm = min(tm, N)  # block dim == full array dim is always legal

    # One-time casts outside the kernel: matmul operands to bf16, everything
    # else (biases, LN scale/shift) to f32.
    def prep(name, arr):
        if name in ("w1", "w2", "w4", "w5", "w3"):
            return arr.astype(jnp.bfloat16)
        return arr.astype(jnp.float32)

    weight_order = [
        "w1", "b1", "g1", "be1",
        "w2", "b2", "g2", "be2",
        "w4", "b4", "g4", "be4",
        "w5", "b5", "g5", "be5",
        "w3", "b3",
    ]
    weight_args = [prep(k, params[k]) for k in weight_order]

    def full_spec(arr):
        nd = arr.ndim
        return pl.BlockSpec(arr.shape, lambda i, _nd=nd: (0,) * _nd)

    grid = (pl.cdiv(N, tm),)
    in_specs = [pl.BlockSpec((tm, IN_DIM), lambda i: (i, 0))]
    in_specs += [full_spec(a) for a in weight_args]

    return pl.pallas_call(
        layernorm_net_kernel,
        out_shape=jax.ShapeDtypeStruct((N, out_dim), x.dtype),
        grid_spec=pltpu.PrefetchScalarGridSpec(
            num_scalar_prefetch=0,
            grid=grid,
            in_specs=in_specs,
            out_specs=pl.BlockSpec((tm, out_dim), lambda i: (i, 0)),
        ),
        compiler_params=pltpu.CompilerParams(
            dimension_semantics=("parallel",),
            vmem_limit_bytes=48 * 1024 * 1024,
        ),
    )(x, *weight_args)


def init_params(key, hidden_dim, out_dim, dtype=jnp.float32):
    """Deterministic synthetic init (shapes match nn.Linear / nn.LayerNorm)."""
    ks = jax.random.split(key, 10)

    def linear(kw, kb, fan_in, fan_out):
        bound = 1.0 / jnp.sqrt(fan_in)
        w = jax.random.uniform(kw, (fan_in, fan_out), dtype, -bound, bound)
        b = jax.random.uniform(kb, (1, fan_out), dtype, -bound, bound)
        return w, b

    w1, b1 = linear(ks[0], ks[1], IN_DIM, hidden_dim)
    w2, b2 = linear(ks[2], ks[3], hidden_dim, hidden_dim)
    w4, b4 = linear(ks[4], ks[5], hidden_dim, hidden_dim)
    w5, b5 = linear(ks[6], ks[7], hidden_dim, hidden_dim)
    w3, b3 = linear(ks[8], ks[9], hidden_dim, out_dim)

    ones = jnp.ones((1, hidden_dim), dtype)
    zeros = jnp.zeros((1, hidden_dim), dtype)
    return dict(
        w1=w1, b1=b1, g1=ones, be1=zeros,
        w2=w2, b2=b2, g2=ones, be2=zeros,
        w4=w4, b4=b4, g4=ones, be4=zeros,
        w5=w5, b5=b5, g5=ones, be5=zeros,
        w3=w3, b3=b3,
    )


def reference(x, p):
    """Plain-JAX f32 reference of the PyTorch forward (eval mode)."""
    def ln(h, g, b):
        m = jnp.mean(h, -1, keepdims=True)
        v = jnp.mean((h - m) ** 2, -1, keepdims=True)
        return (h - m) * jax.lax.rsqrt(v + EPS) * g + b

    h = jnp.maximum(ln(x @ p["w1"] + p["b1"], p["g1"], p["be1"]), 0.0)
    h = jnp.maximum(ln(h @ p["w2"] + p["b2"], p["g2"], p["be2"]), 0.0)
    h = jnp.maximum(ln(h @ p["w4"] + p["b4"], p["g4"], p["be4"]), 0.0)
    h = jnp.maximum(ln(h @ p["w5"] + p["b5"], p["g5"], p["be5"]), 0.0)
    return h @ p["w3"] + p["b3"]


if __name__ == "__main__":
    hidden_dim, out_dim = 128, 128
    N = 256          # small batch; 2 grid steps at tm=128 (keeps both v7x TCs busy)
    tm = 128

    key = jax.random.PRNGKey(0)
    kx, kp = jax.random.split(key)
    x = jax.random.normal(kx, (N, IN_DIM), jnp.float32)
    params = init_params(kp, hidden_dim, out_dim, jnp.float32)

    out = layernorm_net(x, params, tm=tm)
    out = jax.block_until_ready(out)

    ref = reference(x, params)
    assert out.shape == (N, out_dim)
    # bf16 MXU inputs with f32 accumulation -> compare to the f32 reference
    # with a correspondingly looser tolerance.
    assert jnp.allclose(out, ref, atol=5e-2, rtol=5e-2), float(
        jnp.max(jnp.abs(out - ref))
    )
    print("KERNEL_OK")
</pallas_src>

<mosaic_0001>
module attributes {stable_mosaic.version = 11 : i64} {
  func.func @layernorm_net_kernel(%arg0: i32, %arg1: memref<128x512xf32, #tpu.memory_space<vmem>>, %arg2: memref<512x128xbf16, #tpu.memory_space<vmem>>, %arg3: memref<1x128xf32, #tpu.memory_space<vmem>>, %arg4: memref<1x128xf32, #tpu.memory_space<vmem>>, %arg5: memref<1x128xf32, #tpu.memory_space<vmem>>, %arg6: memref<128x128xbf16, #tpu.memory_space<vmem>>, %arg7: memref<1x128xf32, #tpu.memory_space<vmem>>, %arg8: memref<1x128xf32, #tpu.memory_space<vmem>>, %arg9: memref<1x128xf32, #tpu.memory_space<vmem>>, %arg10: memref<128x128xbf16, #tpu.memory_space<vmem>>, %arg11: memref<1x128xf32, #tpu.memory_space<vmem>>, %arg12: memref<1x128xf32, #tpu.memory_space<vmem>>, %arg13: memref<1x128xf32, #tpu.memory_space<vmem>>, %arg14: memref<128x128xbf16, #tpu.memory_space<vmem>>, %arg15: memref<1x128xf32, #tpu.memory_space<vmem>>, %arg16: memref<1x128xf32, #tpu.memory_space<vmem>>, %arg17: memref<1x128xf32, #tpu.memory_space<vmem>>, %arg18: memref<128x128xbf16, #tpu.memory_space<vmem>>, %arg19: memref<1x128xf32, #tpu.memory_space<vmem>>, %arg20: memref<128x128xf32, #tpu.memory_space<vmem>>) attributes {dimension_semantics = [#tpu.dimension_semantics<parallel>], iteration_bounds = array<i64: 2>, scalar_prefetch = 0 : i64, scratch_operands = 0 : i64, tpu.core_type = #tpu.core_type<tc>, window_params = [{transform_indices = @transform_0, window_bounds = array<i64: 128, 512>}, {pipeline_mode = #tpu.pipeline_mode<synchronous>, transform_indices = @transform_1, window_bounds = array<i64: 512, 128>}, {pipeline_mode = #tpu.pipeline_mode<synchronous>, transform_indices = @transform_2, window_bounds = array<i64: 1, 128>}, {pipeline_mode = #tpu.pipeline_mode<synchronous>, transform_indices = @transform_3, window_bounds = array<i64: 1, 128>}, {pipeline_mode = #tpu.pipeline_mode<synchronous>, transform_indices = @transform_4, window_bounds = array<i64: 1, 128>}, {pipeline_mode = #tpu.pipeline_mode<synchronous>, transform_indices = @transform_5, window_bounds = array<i64: 128, 128>}, {pipeline_mode = #tpu.pipeline_mode<synchronous>, transform_indices = @transform_6, window_bounds = array<i64: 1, 128>}, {pipeline_mode = #tpu.pipeline_mode<synchronous>, transform_indices = @transform_7, window_bounds = array<i64: 1, 128>}, {pipeline_mode = #tpu.pipeline_mode<synchronous>, transform_indices = @transform_8, window_bounds = array<i64: 1, 128>}, {pipeline_mode = #tpu.pipeline_mode<synchronous>, transform_indices = @transform_9, window_bounds = array<i64: 128, 128>}, {pipeline_mode = #tpu.pipeline_mode<synchronous>, transform_indices = @transform_10, window_bounds = array<i64: 1, 128>}, {pipeline_mode = #tpu.pipeline_mode<synchronous>, transform_indices = @transform_11, window_bounds = array<i64: 1, 128>}, {pipeline_mode = #tpu.pipeline_mode<synchronous>, transform_indices = @transform_12, window_bounds = array<i64: 1, 128>}, {pipeline_mode = #tpu.pipeline_mode<synchronous>, transform_indices = @transform_13, window_bounds = array<i64: 128, 128>}, {pipeline_mode = #tpu.pipeline_mode<synchronous>, transform_indices = @transform_14, window_bounds = array<i64: 1, 128>}, {pipeline_mode = #tpu.pipeline_mode<synchronous>, transform_indices = @transform_15, window_bounds = array<i64: 1, 128>}, {pipeline_mode = #tpu.pipeline_mode<synchronous>, transform_indices = @transform_16, window_bounds = array<i64: 1, 128>}, {pipeline_mode = #tpu.pipeline_mode<synchronous>, transform_indices = @transform_17, window_bounds = array<i64: 128, 128>}, {pipeline_mode = #tpu.pipeline_mode<synchronous>, transform_indices = @transform_18, window_bounds = array<i64: 1, 128>}, {transform_indices = @transform_19, window_bounds = array<i64: 128, 128>}]} {
    %c0 = arith.constant 0 : index
    %c0_0 = arith.constant 0 : index
    %0 = vector.load %arg1[%c0, %c0_0] : memref<128x512xf32, #tpu.memory_space<vmem>>, vector<128x512xf32>
    %1 = arith.truncf %0 : vector<128x512xf32> to vector<128x512xbf16>
    %c0_1 = arith.constant 0 : index
    %c0_2 = arith.constant 0 : index
    %2 = vector.load %arg2[%c0_1, %c0_2] : memref<512x128xbf16, #tpu.memory_space<vmem>>, vector<512x128xbf16>
    %cst = arith.constant dense<0.000000e+00> : vector<128x128xf32>
    %3 = tpu.matmul %1, %2, %cst {dimension_numbers = #tpu.dot_dimension_numbers<[1], [0], [0], [1], [0, 0, 1, 1], [], []>} : vector<128x512xbf16>, vector<512x128xbf16>, vector<128x128xf32> -> vector<128x128xf32>
    %c0_3 = arith.constant 0 : index
    %c0_4 = arith.constant 0 : index
    %4 = vector.load %arg3[%c0_3, %c0_4] : memref<1x128xf32, #tpu.memory_space<vmem>>, vector<1x128xf32>
    %5 = vector.broadcast %4 : vector<1x128xf32> to vector<128x128xf32>
    %6 = arith.addf %3, %5 : vector<128x128xf32>
    %c0_5 = arith.constant 0 : index
    %c0_6 = arith.constant 0 : index
    %7 = vector.load %arg4[%c0_5, %c0_6] : memref<1x128xf32, #tpu.memory_space<vmem>>, vector<1x128xf32>
    %c0_7 = arith.constant 0 : index
    %c0_8 = arith.constant 0 : index
    %8 = vector.load %arg5[%c0_7, %c0_8] : memref<1x128xf32, #tpu.memory_space<vmem>>, vector<1x128xf32>
    %cst_9 = arith.constant dense<0.000000e+00> : vector<128xf32>
    %9 = vector.multi_reduction <add>, %6, %cst_9 [1] : vector<128x128xf32> to vector<128xf32>
    %10 = vector.shape_cast %9 : vector<128xf32> to vector<128x1xf32>
    %cst_10 = arith.constant 7.812500e-03 : f32
    %11 = vector.broadcast %cst_10 : f32 to vector<128x1xf32>
    %12 = arith.mulf %10, %11 : vector<128x1xf32>
    %13 = vector.broadcast %12 : vector<128x1xf32> to vector<128x128xf32>
    %14 = arith.subf %6, %13 : vector<128x128xf32>
    %15 = arith.mulf %14, %14 : vector<128x128xf32>
    %cst_11 = arith.constant dense<0.000000e+00> : vector<128xf32>
    %16 = vector.multi_reduction <add>, %15, %cst_11 [1] : vector<128x128xf32> to vector<128xf32>
    %17 = vector.shape_cast %16 : vector<128xf32> to vector<128x1xf32>
    %cst_12 = arith.constant 7.812500e-03 : f32
    %18 = vector.broadcast %cst_12 : f32 to vector<128x1xf32>
    %19 = arith.mulf %17, %18 : vector<128x1xf32>
    %cst_13 = arith.constant 9.99999974E-6 : f32
    %20 = vector.broadcast %cst_13 : f32 to vector<128x1xf32>
    %21 = arith.addf %19, %20 : vector<128x1xf32>
    %22 = math.rsqrt %21 : vector<128x1xf32>
    %23 = vector.broadcast %22 : vector<128x1xf32> to vector<128x128xf32>
    %24 = arith.mulf %14, %23 : vector<128x128xf32>
    %25 = vector.broadcast %7 : vector<1x128xf32> to vector<128x128xf32>
    %26 = arith.mulf %24, %25 : vector<128x128xf32>
    %27 = vector.broadcast %8 : vector<1x128xf32> to vector<128x128xf32>
    %28 = arith.addf %26, %27 : vector<128x128xf32>
    %cst_14 = arith.constant 0.000000e+00 : f32
    %29 = vector.broadcast %cst_14 : f32 to vector<128x128xf32>
    %30 = arith.maximumf %28, %29 : vector<128x128xf32>
    %31 = arith.truncf %30 : vector<128x128xf32> to vector<128x128xbf16>
    %c0_15 = arith.constant 0 : index
    %c0_16 = arith.constant 0 : index
    %32 = vector.load %arg6[%c0_15, %c0_16] : memref<128x128xbf16, #tpu.memory_space<vmem>>, vector<128x128xbf16>
    %cst_17 = arith.constant dense<0.000000e+00> : vector<128x128xf32>
    %33 = tpu.matmul %31, %32, %cst_17 {dimension_numbers = #tpu.dot_dimension_numbers<[1], [0], [0], [1], [0, 0, 1, 1], [], []>} : vector<128x128xbf16>, vector<128x128xbf16>, vector<128x128xf32> -> vector<128x128xf32>
    %c0_18 = arith.constant 0 : index
    %c0_19 = arith.constant 0 : index
    %34 = vector.load %arg7[%c0_18, %c0_19] : memref<1x128xf32, #tpu.memory_space<vmem>>, vector<1x128xf32>
    %35 = vector.broadcast %34 : vector<1x128xf32> to vector<128x128xf32>
    %36 = arith.addf %33, %35 : vector<128x128xf32>
    %c0_20 = arith.constant 0 : index
    %c0_21 = arith.constant 0 : index
    %37 = vector.load %arg8[%c0_20, %c0_21] : memref<1x128xf32, #tpu.memory_space<vmem>>, vector<1x128xf32>
    %c0_22 = arith.constant 0 : index
    %c0_23 = arith.constant 0 : index
    %38 = vector.load %arg9[%c0_22, %c0_23] : memref<1x128xf32, #tpu.memory_space<vmem>>, vector<1x128xf32>
    %cst_24 = arith.constant dense<0.000000e+00> : vector<128xf32>
    %39 = vector.multi_reduction <add>, %36, %cst_24 [1] : vector<128x128xf32> to vector<128xf32>
    %40 = vector.shape_cast %39 : vector<128xf32> to vector<128x1xf32>
    %cst_25 = arith.constant 7.812500e-03 : f32
    %41 = vector.broadcast %cst_25 : f32 to vector<128x1xf32>
    %42 = arith.mulf %40, %41 : vector<128x1xf32>
    %43 = vector.broadcast %42 : vector<128x1xf32> to vector<128x128xf32>
    %44 = arith.subf %36, %43 : vector<128x128xf32>
    %45 = arith.mulf %44, %44 : vector<128x128xf32>
    %cst_26 = arith.constant dense<0.000000e+00> : vector<128xf32>
    %46 = vector.multi_reduction <add>, %45, %cst_26 [1] : vector<128x128xf32> to vector<128xf32>
    %47 = vector.shape_cast %46 : vector<128xf32> to vector<128x1xf32>
    %cst_27 = arith.constant 7.812500e-03 : f32
    %48 = vector.broadcast %cst_27 : f32 to vector<128x1xf32>
    %49 = arith.mulf %47, %48 : vector<128x1xf32>
    %cst_28 = arith.constant 9.99999974E-6 : f32
    %50 = vector.broadcast %cst_28 : f32 to vector<128x1xf32>
    %51 = arith.addf %49, %50 : vector<128x1xf32>
    %52 = math.rsqrt %51 : vector<128x1xf32>
    %53 = vector.broadcast %52 : vector<128x1xf32> to vector<128x128xf32>
    %54 = arith.mulf %44, %53 : vector<128x128xf32>
    %55 = vector.broadcast %37 : vector<1x128xf32> to vector<128x128xf32>
    %56 = arith.mulf %54, %55 : vector<128x128xf32>
    %57 = vector.broadcast %38 : vector<1x128xf32> to vector<128x128xf32>
    %58 = arith.addf %56, %57 : vector<128x128xf32>
    %cst_29 = arith.constant 0.000000e+00 : f32
    %59 = vector.broadcast %cst_29 : f32 to vector<128x128xf32>
    %60 = arith.maximumf %58, %59 : vector<128x128xf32>
    %61 = arith.truncf %60 : vector<128x128xf32> to vector<128x128xbf16>
    %c0_30 = arith.constant 0 : index
    %c0_31 = arith.constant 0 : index
    %62 = vector.load %arg10[%c0_30, %c0_31] : memref<128x128xbf16, #tpu.memory_space<vmem>>, vector<128x128xbf16>
    %cst_32 = arith.constant dense<0.000000e+00> : vector<128x128xf32>
    %63 = tpu.matmul %61, %62, %cst_32 {dimension_numbers = #tpu.dot_dimension_numbers<[1], [0], [0], [1], [0, 0, 1, 1], [], []>} : vector<128x128xbf16>, vector<128x128xbf16>, vector<128x128xf32> -> vector<128x128xf32>
    %c0_33 = arith.constant 0 : index
    %c0_34 = arith.constant 0 : index
    %64 = vector.load %arg11[%c0_33, %c0_34] : memref<1x128xf32, #tpu.memory_space<vmem>>, vector<1x128xf32>
    %65 = vector.broadcast %64 : vector<1x128xf32> to vector<128x128xf32>
    %66 = arith.addf %63, %65 : vector<128x128xf32>
    %c0_35 = arith.constant 0 : index
    %c0_36 = arith.constant 0 : index
    %67 = vector.load %arg12[%c0_35, %c0_36] : memref<1x128xf32, #tpu.memory_space<vmem>>, vector<1x128xf32>
    %c0_37 = arith.constant 0 : index
    %c0_38 = arith.constant 0 : index
    %68 = vector.load %arg13[%c0_37, %c0_38] : memref<1x128xf32, #tpu.memory_space<vmem>>, vector<1x128xf32>
    %cst_39 = arith.constant dense<0.000000e+00> : vector<128xf32>
    %69 = vector.multi_reduction <add>, %66, %cst_39 [1] : vector<128x128xf32> to vector<128xf32>
    %70 = vector.shape_cast %69 : vector<128xf32> to vector<128x1xf32>
    %cst_40 = arith.constant 7.812500e-03 : f32
    %71 = vector.broadcast %cst_40 : f32 to vector<128x1xf32>
    %72 = arith.mulf %70, %71 : vector<128x1xf32>
    %73 = vector.broadcast %72 : vector<128x1xf32> to vector<128x128xf32>
    %74 = arith.subf %66, %73 : vector<128x128xf32>
    %75 = arith.mulf %74, %74 : vector<128x128xf32>
    %cst_41 = arith.constant dense<0.000000e+00> : vector<128xf32>
    %76 = vector.multi_reduction <add>, %75, %cst_41 [1] : vector<128x128xf32> to vector<128xf32>
    %77 = vector.shape_cast %76 : vector<128xf32> to vector<128x1xf32>
    %cst_42 = arith.constant 7.812500e-03 : f32
    %78 = vector.broadcast %cst_42 : f32 to vector<128x1xf32>
    %79 = arith.mulf %77, %78 : vector<128x1xf32>
    %cst_43 = arith.constant 9.99999974E-6 : f32
    %80 = vector.broadcast %cst_43 : f32 to vector<128x1xf32>
    %81 = arith.addf %79, %80 : vector<128x1xf32>
    %82 = math.rsqrt %81 : vector<128x1xf32>
    %83 = vector.broadcast %82 : vector<128x1xf32> to vector<128x128xf32>
    %84 = arith.mulf %74, %83 : vector<128x128xf32>
    %85 = vector.broadcast %67 : vector<1x128xf32> to vector<128x128xf32>
    %86 = arith.mulf %84, %85 : vector<128x128xf32>
    %87 = vector.broadcast %68 : vector<1x128xf32> to vector<128x128xf32>
    %88 = arith.addf %86, %87 : vector<128x128xf32>
    %cst_44 = arith.constant 0.000000e+00 : f32
    %89 = vector.broadcast %cst_44 : f32 to vector<128x128xf32>
    %90 = arith.maximumf %88, %89 : vector<128x128xf32>
    %91 = arith.truncf %90 : vector<128x128xf32> to vector<128x128xbf16>
    %c0_45 = arith.constant 0 : index
    %c0_46 = arith.constant 0 : index
    %92 = vector.load %arg14[%c0_45, %c0_46] : memref<128x128xbf16, #tpu.memory_space<vmem>>, vector<128x128xbf16>
    %cst_47 = arith.constant dense<0.000000e+00> : vector<128x128xf32>
    %93 = tpu.matmul %91, %92, %cst_47 {dimension_numbers = #tpu.dot_dimension_numbers<[1], [0], [0], [1], [0, 0, 1, 1], [], []>} : vector<128x128xbf16>, vector<128x128xbf16>, vector<128x128xf32> -> vector<128x128xf32>
    %c0_48 = arith.constant 0 : index
    %c0_49 = arith.constant 0 : index
    %94 = vector.load %arg15[%c0_48, %c0_49] : memref<1x128xf32, #tpu.memory_space<vmem>>, vector<1x128xf32>
    %95 = vector.broadcast %94 : vector<1x128xf32> to vector<128x128xf32>
    %96 = arith.addf %93, %95 : vector<128x128xf32>
    %c0_50 = arith.constant 0 : index
    %c0_51 = arith.constant 0 : index
    %97 = vector.load %arg16[%c0_50, %c0_51] : memref<1x128xf32, #tpu.memory_space<vmem>>, vector<1x128xf32>
    %c0_52 = arith.constant 0 : index
    %c0_53 = arith.constant 0 : index
    %98 = vector.load %arg17[%c0_52, %c0_53] : memref<1x128xf32, #tpu.memory_space<vmem>>, vector<1x128xf32>
    %cst_54 = arith.constant dense<0.000000e+00> : vector<128xf32>
    %99 = vector.multi_reduction <add>, %96, %cst_54 [1] : vector<128x128xf32> to vector<128xf32>
    %100 = vector.shape_cast %99 : vector<128xf32> to vector<128x1xf32>
    %cst_55 = arith.constant 7.812500e-03 : f32
    %101 = vector.broadcast %cst_55 : f32 to vector<128x1xf32>
    %102 = arith.mulf %100, %101 : vector<128x1xf32>
    %103 = vector.broadcast %102 : vector<128x1xf32> to vector<128x128xf32>
    %104 = arith.subf %96, %103 : vector<128x128xf32>
    %105 = arith.mulf %104, %104 : vector<128x128xf32>
    %cst_56 = arith.constant dense<0.000000e+00> : vector<128xf32>
    %106 = vector.multi_reduction <add>, %105, %cst_56 [1] : vector<128x128xf32> to vector<128xf32>
    %107 = vector.shape_cast %106 : vector<128xf32> to vector<128x1xf32>
    %cst_57 = arith.constant 7.812500e-03 : f32
    %108 = vector.broadcast %cst_57 : f32 to vector<128x1xf32>
    %109 = arith.mulf %107, %108 : vector<128x1xf32>
    %cst_58 = arith.constant 9.99999974E-6 : f32
    %110 = vector.broadcast %cst_58 : f32 to vector<128x1xf32>
    %111 = arith.addf %109, %110 : vector<128x1xf32>
    %112 = math.rsqrt %111 : vector<128x1xf32>
    %113 = vector.broadcast %112 : vector<128x1xf32> to vector<128x128xf32>
    %114 = arith.mulf %104, %113 : vector<128x128xf32>
    %115 = vector.broadcast %97 : vector<1x128xf32> to vector<128x128xf32>
    %116 = arith.mulf %114, %115 : vector<128x128xf32>
    %117 = vector.broadcast %98 : vector<1x128xf32> to vector<128x128xf32>
    %118 = arith.addf %116, %117 : vector<128x128xf32>
    %cst_59 = arith.constant 0.000000e+00 : f32
    %119 = vector.broadcast %cst_59 : f32 to vector<128x128xf32>
    %120 = arith.maximumf %118, %119 : vector<128x128xf32>
    %121 = arith.truncf %120 : vector<128x128xf32> to vector<128x128xbf16>
    %c0_60 = arith.constant 0 : index
    %c0_61 = arith.constant 0 : index
    %122 = vector.load %arg18[%c0_60, %c0_61] : memref<128x128xbf16, #tpu.memory_space<vmem>>, vector<128x128xbf16>
    %cst_62 = arith.constant dense<0.000000e+00> : vector<128x128xf32>
    %123 = tpu.matmul %121, %122, %cst_62 {dimension_numbers = #tpu.dot_dimension_numbers<[1], [0], [0], [1], [0, 0, 1, 1], [], []>} : vector<128x128xbf16>, vector<128x128xbf16>, vector<128x128xf32> -> vector<128x128xf32>
    %c0_63 = arith.constant 0 : index
    %c0_64 = arith.constant 0 : index
    %124 = vector.load %arg19[%c0_63, %c0_64] : memref<1x128xf32, #tpu.memory_space<vmem>>, vector<1x128xf32>
    %125 = vector.broadcast %124 : vector<1x128xf32> to vector<128x128xf32>
    %126 = arith.addf %123, %125 : vector<128x128xf32>
    %c0_65 = arith.constant 0 : index
    %c0_66 = arith.constant 0 : index
    %127 = vector.load %arg20[%c0_65, %c0_66] : memref<128x128xf32, #tpu.memory_space<vmem>>, vector<128x128xf32>
    tpu.vector_store %arg20[%c0_65, %c0_66], %126 {strides = array<i32>} : memref<128x128xf32, #tpu.memory_space<vmem>>, vector<128x128xf32>,
    return
  }
  func.func @transform_0(%arg0: i32) -> (i32, i32) {
    %c0_i32 = arith.constant 0 : i32
    %c0_i32_0 = arith.constant 0 : i32
    return %arg0, %c0_i32 : i32, i32
  }
  func.func @transform_1(%arg0: i32) -> (i32, i32) {
    %c0_i32 = arith.constant 0 : i32
    %c0_i32_0 = arith.constant 0 : i32
    %c0_i32_1 = arith.constant 0 : i32
    return %c0_i32, %c0_i32_0 : i32, i32
  }
  func.func @transform_2(%arg0: i32) -> (i32, i32) {
    %c0_i32 = arith.constant 0 : i32
    %c0_i32_0 = arith.constant 0 : i32
    %c0_i32_1 = arith.constant 0 : i32
    return %c0_i32, %c0_i32_0 : i32, i32
  }
  func.func @transform_3(%arg0: i32) -> (i32, i32) {
    %c0_i32 = arith.constant 0 : i32
    %c0_i32_0 = arith.constant 0 : i32
    %c0_i32_1 = arith.constant 0 : i32
    return %c0_i32, %c0_i32_0 : i32, i32
  }
  func.func @transform_4(%arg0: i32) -> (i32, i32) {
    %c0_i32 = arith.constant 0 : i32
    %c0_i32_0 = arith.constant 0 : i32
    %c0_i32_1 = arith.constant 0 : i32
    return %c0_i32, %c0_i32_0 : i32, i32
  }
  func.func @transform_5(%arg0: i32) -> (i32, i32) {
    %c0_i32 = arith.constant 0 : i32
    %c0_i32_0 = arith.constant 0 : i32
    %c0_i32_1 = arith.constant 0 : i32
    return %c0_i32, %c0_i32_0 : i32, i32
  }
  func.func @transform_6(%arg0: i32) -> (i32, i32) {
    %c0_i32 = arith.constant 0 : i32
    %c0_i32_0 = arith.constant 0 : i32
    %c0_i32_1 = arith.constant 0 : i32
    return %c0_i32, %c0_i32_0 : i32, i32
  }
  func.func @transform_7(%arg0: i32) -> (i32, i32) {
    %c0_i32 = arith.constant 0 : i32
    %c0_i32_0 = arith.constant 0 : i32
    %c0_i32_1 = arith.constant 0 : i32
    return %c0_i32, %c0_i32_0 : i32, i32
  }
  func.func @transform_8(%arg0: i32) -> (i32, i32) {
    %c0_i32 = arith.constant 0 : i32
    %c0_i32_0 = arith.constant 0 : i32
    %c0_i32_1 = arith.constant 0 : i32
    return %c0_i32, %c0_i32_0 : i32, i32
  }
  func.func @transform_9(%arg0: i32) -> (i32, i32) {
    %c0_i32 = arith.constant 0 : i32
    %c0_i32_0 = arith.constant 0 : i32
    %c0_i32_1 = arith.constant 0 : i32
    return %c0_i32, %c0_i32_0 : i32, i32
  }
  func.func @transform_10(%arg0: i32) -> (i32, i32) {
    %c0_i32 = arith.constant 0 : i32
    %c0_i32_0 = arith.constant 0 : i32
    %c0_i32_1 = arith.constant 0 : i32
    return %c0_i32, %c0_i32_0 : i32, i32
  }
  func.func @transform_11(%arg0: i32) -> (i32, i32) {
    %c0_i32 = arith.constant 0 : i32
    %c0_i32_0 = arith.constant 0 : i32
    %c0_i32_1 = arith.constant 0 : i32
    return %c0_i32, %c0_i32_0 : i32, i32
  }
  func.func @transform_12(%arg0: i32) -> (i32, i32) {
    %c0_i32 = arith.constant 0 : i32
    %c0_i32_0 = arith.constant 0 : i32
    %c0_i32_1 = arith.constant 0 : i32
    return %c0_i32, %c0_i32_0 : i32, i32
  }
  func.func @transform_13(%arg0: i32) -> (i32, i32) {
    %c0_i32 = arith.constant 0 : i32
    %c0_i32_0 = arith.constant 0 : i32
    %c0_i32_1 = arith.constant 0 : i32
    return %c0_i32, %c0_i32_0 : i32, i32
  }
  func.func @transform_14(%arg0: i32) -> (i32, i32) {
    %c0_i32 = arith.constant 0 : i32
    %c0_i32_0 = arith.constant 0 : i32
    %c0_i32_1 = arith.constant 0 : i32
    return %c0_i32, %c0_i32_0 : i32, i32
  }
  func.func @transform_15(%arg0: i32) -> (i32, i32) {
    %c0_i32 = arith.constant 0 : i32
    %c0_i32_0 = arith.constant 0 : i32
    %c0_i32_1 = arith.constant 0 : i32
    return %c0_i32, %c0_i32_0 : i32, i32
  }
  func.func @transform_16(%arg0: i32) -> (i32, i32) {
    %c0_i32 = arith.constant 0 : i32
    %c0_i32_0 = arith.constant 0 : i32
    %c0_i32_1 = arith.constant 0 : i32
    return %c0_i32, %c0_i32_0 : i32, i32
  }
  func.func @transform_17(%arg0: i32) -> (i32, i32) {
    %c0_i32 = arith.constant 0 : i32
    %c0_i32_0 = arith.constant 0 : i32
    %c0_i32_1 = arith.constant 0 : i32
    return %c0_i32, %c0_i32_0 : i32, i32
  }
  func.func @transform_18(%arg0: i32) -> (i32, i32) {
    %c0_i32 = arith.constant 0 : i32
    %c0_i32_0 = arith.constant 0 : i32
    %c0_i32_1 = arith.constant 0 : i32
    return %c0_i32, %c0_i32_0 : i32, i32
  }
  func.func @transform_19(%arg0: i32) -> (i32, i32) {
    %c0_i32 = arith.constant 0 : i32
    %c0_i32_0 = arith.constant 0 : i32
    return %arg0, %c0_i32 : i32, i32
  }
}

</mosaic_0001>

<bundles_post_ra>
// kernel: layernorm_net.1
= control target key start
LH: loop header
LB: loop body
LE: loop exit
PB: predicated region body
PF: predicated region fallthrough
CT: control target
= control target key end

     0   :  { %s4809_s0 = inlined_call_operand.vmem [shape: f32[256,512], index: 0, kind: input, shape index: {}]   ;;  %s4810_s1 = inlined_call_operand.vmem [shape: bf16[512,128], index: 1, kind: input, shape index: {}]   ;;  %s4811_s2 = inlined_call_operand.vmem [shape: f32[1,128], index: 2, kind: input, shape index: {}]   ;;  %s4812_s3 = inlined_call_operand.vmem [shape: f32[1,128], index: 3, kind: input, shape index: {}]   ;;  %s4813_s4 = inlined_call_operand.vmem [shape: f32[1,128], index: 4, kind: input, shape index: {}]   ;;  %s4814_s5 = inlined_call_operand.vmem [shape: bf16[128,128], index: 5, kind: input, shape index: {}]   ;;  %s4815_s6 = inlined_call_operand.vmem [shape: f32[1,128], index: 6, kind: input, shape index: {}]   ;;  %s4816_s7 = inlined_call_operand.vmem [shape: f32[1,128], index: 7, kind: input, shape index: {}]   ;;  %s4817_s8 = inlined_call_operand.vmem [shape: f32[1,128], index: 8, kind: input, shape index: {}]   ;;  %s4818_s9 = inlined_call_operand.vmem [shape: bf16[128,128], index: 9, kind: input, shape index: {}]   ;;  %s4819_s10 = inlined_call_operand.vmem [shape: f32[1,128], index: 10, kind: input, shape index: {}]   ;;  %s4820_s11 = inlined_call_operand.vmem [shape: f32[1,128], index: 11, kind: input, shape index: {}]   ;;  %s4821_s12 = inlined_call_operand.vmem [shape: f32[1,128], index: 12, kind: input, shape index: {}]   ;;  %s4822_s13 = inlined_call_operand.vmem [shape: bf16[128,128], index: 13, kind: input, shape index: {}]   ;;  %s4823_s14 = inlined_call_operand.vmem [shape: f32[1,128], index: 14, kind: input, shape index: {}]   ;;  %s4824_s15 = inlined_call_operand.vmem [shape: f32[1,128], index: 15, kind: input, shape index: {}]   ;;  %s4825_s16 = inlined_call_operand.vmem [shape: f32[1,128], index: 16, kind: input, shape index: {}]   ;;  %s4826_s17 = inlined_call_operand.vmem [shape: bf16[128,128], index: 17, kind: input, shape index: {}]   ;;  %s4827_s18 = inlined_call_operand.vmem [shape: f32[1,128], index: 18, kind: input, shape index: {}]   ;;  %s4828_s19 = inlined_call_operand.hbm [shape: f32[256,128], index: 19, kind: output, shape index: {}]  }
   0x1   :  { %4837 = sst [smem:[#allocation11_spill]] %s4809_s0 }
   0x2   :  { %4838 = sst [smem:[#allocation12_spill]] %s4810_s1 }
   0x3   :  { %4839 = sst [smem:[#allocation13_spill]] %s4811_s2 }
   0x4   :  { %4840 = sst [smem:[#allocation14_spill]] %s4812_s3 }
   0x5   :  { %4841 = sst [smem:[#allocation15_spill]] %s4828_s19 }
   0x6   :  { %24 = vsyncpa [#allocation3], 0 }
   0x7   :  { %26 = vsyncpa [#allocation3 + $0x1], 0  ;;  %s3721_s0 = smov 0   ;;  %s3723_s30 = smov 0  }
   0x8   :  { %s3725_s20 = smov 0   ;;  %s3727_s21 = smov 0  }
   0x9 LB: > { %4842 = sst [smem:[#allocation5_spill]] %s3604_s0  ;;  %s3742_s1 = sadd.s32 4294967295, %s3616_s21   ;;  %s3616_s21 = sphi %s3727_s21, %s4858_s21   ;;  %s3612_s20 = sphi %s3725_s20, %s4860_s20   ;;  %s3608_s30 = sphi %s3723_s30, %s4862_s30   ;;  %s3604_s0 = sphi %s3721_s0, %s4861_s0  }
   0xa   : > { %4843 = sst [smem:[#allocation6_spill]] %s3612_s20  ;;  %s2909_s22 = sadd.s32 4294967294, %s3616_s21  }
   0xb   : > { %4844 = sst [smem:[#allocation7_spill]] %s3616_s21  ;;  %s3746_s2 = sadd.s32 1, %s3616_s21  }
   0xc   : > { %4845 = sst [smem:[#allocation8_spill]] %s3746_s2  ;;  %s443_s23 = sadd.s32 1, %s3612_s20 }
   0xd   : > { %s440_s24 = ssub.s32 %s3616_s21, %s3746_s2  ;;  %p453_p0 = scmp.ne.s32.totalorder %s3612_s20, %s3608_s30 }
   0xe   : > { %p441_p1 = scmp.eq.s32.totalorder %s440_s24, 0  ;;  %p454_p2 = scmp.eq.s32.totalorder %s3742_s1, 1 }
   0xf   : > { %p459_p3 = scmp.ne.s32.totalorder %s3608_s30, %s3604_s0  ;;  %p460_p4 = scmp.eq.s32.totalorder %s2909_s22, 1 }
  0x10   : > { %s3757_s25 = scalar_select %p441_p1, %s3612_s20, %s443_s23  }
  0x11   : > { %p3759_p5 = por %p454_p2, %p453_p0  ;;  %p3763_p6 = por %p460_p4, %p459_p3 }
  0x12   : > { %4846 = sst [smem:[#allocation9_spill]] %s3757_s25  ;;  %p2912_p7 = scmp.ge.s32.totalorder %s3616_s21, 1 }
  0x13   : > { %s4848_s26 = scalar_select %p3763_p6, 1, 0 }
  0x14   : > { %p542_p8 = scmp.lt.s32.totalorder %s3616_s21, 3 }
  0x15   : > { %4849 = sst [smem:[#allocation10_spill]] %s4848_s26 }
  0x16   : > { %p543_p9 = pnand %p2912_p7, %p542_p8 }
  0x17   : > { %s4850_s29 = sld [smem:[#allocation12_spill]] (!%p543_p9)  ;;  %s2914_s24 = sshll.u32 (!%p543_p9), %s3742_s1, 4 }
  0x18   : > { %546 = sbr.rel (%p543_p9) target bundleno = 2495 (0x9bf), region = 96  ;;  %p600_p10 = scmp.lt.s32.totalorder (!%p543_p9), %s2914_s24, 31 }
  0x19   : > { %s4851_s23 = sld [smem:[#allocation11_spill]] (!%p543_p9)  ;;  %s4852_s27 = sld [smem:[#allocation13_spill]] (!%p543_p9) }
  0x1a   : > { %s3000_s26 = sshll.u32 (!%p543_p9), %s3742_s1, 11  ;;  %s4854_s28 = sld [smem:[#allocation15_spill]] (!%p543_p9) }
  0x1d   : > { %v3362_v0 = vld [vmem:[%s4850_s29 + $0x40] sm:$0xff] (!%p543_p9)   ;;  %v3366_v4 = vld [vmem:[%s4850_s29 + $0x48] sm:$0xff] (!%p543_p9)   ;;  %v3370_v8 = vld [vmem:[%s4850_s29 + $0x50] sm:$0xff] (!%p543_p9)  }
  0x1e   : > { %v3363_v1 = vld [vmem:[%s4850_s29 + $0xc0] sm:$0xff] (!%p543_p9)   ;;  %3001 = vmatprep.subr.bf16.mxu0 (!%p543_p9), %v3362_v0  ;;  %v3367_v5 = vld [vmem:[%s4850_s29 + $0xc8] sm:$0xff] (!%p543_p9)   ;;  %v3371_v9 = vld [vmem:[%s4850_s29 + $0xd0] sm:$0xff] (!%p543_p9)  }
  0x1f   : > { %v3364_v2 = vld [vmem:[%s4850_s29] sm:$0xff]   ;;  %3065 = vmatprep.subr.bf16.mxu1 %v3363_v1  ;;  %v3368_v6 = vld [vmem:[%s4850_s29 + $0x8] sm:$0xff]   ;;  %v3372_v10 = vld [vmem:[%s4850_s29 + $0x10] sm:$0xff]   ;;  %s4864_s24 = smov (!%p600_p10, %s2914_s24), 31 }
  0x20   : > { %v3365_v3 = vld [vmem:[%s4850_s29 + $0x80] sm:$0xff]   ;;  %3002 = vmatpush3.bf16.msra.mxu0 %v3364_v2  ;;  %v3369_v7 = vld [vmem:[%s4850_s29 + $0x88] sm:$0xff]   ;;  %v3373_v11 = vld [vmem:[%s4850_s29 + $0x90] sm:$0xff]   ;;  %s2999_s2 = sshll.u32 %s4864_s24, 5  ;;  %s4853_s24 = sld [smem:[#allocation14_spill]] }
  0x21   : > { %3066 = vmatpush3.bf16.msra.mxu1 %v3365_v3  ;;  %3003 = vmatprep.subr.bf16.mxu0 %v3366_v4  ;;  %v3374_v12 = vld [vmem:[%s4850_s29 + $0x58] sm:$0xff]   ;;  %v3378_v16 = vld [vmem:[%s4850_s29 + $0x60] sm:$0xff]   ;;  %v3382_v20 = vld [vmem:[%s4850_s29 + $0x68] sm:$0xff]   ;;  %s3863_s20 = scalar_lea.vmem %s4851_s23, %s2999_s2  ;;  %s596_s23 = sand.u32 1, %s3608_s30  }
  0x22   : > { %3067 = vmatprep.subr.bf16.mxu1 %v3367_v5  ;;  %v3375_v13 = vld [vmem:[%s4850_s29 + $0xd8] sm:$0xff]   ;;  %v3379_v17 = vld [vmem:[%s4850_s29 + $0xe0] sm:$0xff]   ;;  %v3383_v21 = vld [vmem:[%s4850_s29 + $0xe8] sm:$0xff]   ;;  %s4759_s22 = scalar_lea.hbm %s4854_s28, %s3000_s26  ;;  %s4768_s1 = scalar_lea.sflag [#allocation3], %s596_s23 }
  0x23   : > { %v3376_v14 = vld [vmem:[%s4850_s29 + $0x18] sm:$0xff]   ;;  %v3380_v18 = vld [vmem:[%s4850_s29 + $0x20] sm:$0xff]   ;;  %v3384_v22 = vld [vmem:[%s4850_s29 + $0x28] sm:$0xff]  }
  0x24   : > { %3004 = vmatpush3.bf16.msra.mxu0 %v3368_v6  ;;  %v3377_v15 = vld [vmem:[%s4850_s29 + $0x98] sm:$0xff]   ;;  %v3381_v19 = vld [vmem:[%s4850_s29 + $0xa0] sm:$0xff]   ;;  %v3385_v23 = vld [vmem:[%s4850_s29 + $0xa8] sm:$0xff]  }
  0x25   : > { %3068 = vmatpush3.bf16.msra.mxu1 %v3369_v7  ;;  %3005 = vmatprep.subr.bf16.mxu0 %v3370_v8  ;;  %v3386_v24 = vld [vmem:[%s4850_s29 + $0x70] sm:$0xff]   ;;  %v3390_v28 = vld [vmem:[%s4850_s29 + $0x78] sm:$0xff]   ;;  %v609_v32 = vld [vmem:[%s3863_s20 + $0x8] sm:$0xff] }
  0x26   : > { %3069 = vmatprep.subr.bf16.mxu1 %v3371_v9  ;;  %v3387_v25 = vld [vmem:[%s4850_s29 + $0xf0] sm:$0xff]   ;;  %v3391_v29 = vld [vmem:[%s4850_s29 + $0xf8] sm:$0xff]   ;;  %v613_v33 = vld [vmem:[%s3863_s20 + $0x28] sm:$0xff] }
  0x27   : > { %v3388_v26 = vld [vmem:[%s4850_s29 + $0x30] sm:$0xff]   ;;  %v3392_v30 = vld [vmem:[%s4850_s29 + $0x38] sm:$0xff]   ;;  %v673_v35 = vpack.c.bf16 %v613_v33, %v609_v32  ;;  %v608_v37 = vld [vmem:[%s3863_s20] sm:$0xff] }
  0x28   : > { %3006 = vmatpush3.bf16.msra.mxu0 %v3372_v10  ;;  %v3389_v27 = vld [vmem:[%s4850_s29 + $0xb0] sm:$0xff]   ;;  %v3393_v31 = vld [vmem:[%s4850_s29 + $0xb8] sm:$0xff]   ;;  %v612_v38 = vld [vmem:[%s3863_s20 + $0x20] sm:$0xff] }
  0x29   : > { %3070 = vmatpush3.bf16.msra.mxu1 %v3373_v11  ;;  %3007 = vmatprep.subr.bf16.mxu0 %v3374_v12  ;;  %v611_v34 = vld [vmem:[%s3863_s20 + $0x18] sm:$0xff]  ;;  %v672_v40 = vpack.c.bf16 %v612_v38, %v608_v37  ;;  %v610_v41 = vld [vmem:[%s3863_s20 + $0x10] sm:$0xff]  ;;  %v617_v43 = vld [vmem:[%s3863_s20 + $0x48] sm:$0xff] }
  0x2a   : > { %3071 = vmatprep.subr.bf16.mxu1 %v3375_v13  ;;  %v615_v36 = vld [vmem:[%s3863_s20 + $0x38] sm:$0xff]  ;;  %v614_v42 = vld [vmem:[%s3863_s20 + $0x30] sm:$0xff]  ;;  %999 = vmatprep.mubr.bf16.mxu0 %v673_v35  ;;  %v621_v45 = vld [vmem:[%s3863_s20 + $0x68] sm:$0xff] }
  0x2b   : > { %v675_v39 = vpack.c.bf16 %v615_v36, %v611_v34  ;;  %v674_v44 = vpack.c.bf16 %v614_v42, %v610_v41  ;;  %v619_v46 = vld [vmem:[%s3863_s20 + $0x58] sm:$0xff]  ;;  %v677_v48 = vpack.c.bf16 %v621_v45, %v617_v43  ;;  %v616_v50 = vld [vmem:[%s3863_s20 + $0x40] sm:$0xff]  ;;  %v618_v52 = vld [vmem:[%s3863_s20 + $0x50] sm:$0xff] }
  0x2c   : > { %3008 = vmatpush3.bf16.msra.mxu0 %v3376_v14  ;;  %v623_v47 = vld [vmem:[%s3863_s20 + $0x78] sm:$0xff]  ;;  %v620_v51 = vld [vmem:[%s3863_s20 + $0x60] sm:$0xff]  ;;  %v622_v53 = vld [vmem:[%s3863_s20 + $0x70] sm:$0xff] }
  0x2d   : > { %3072 = vmatpush3.bf16.msra.mxu1 %v3377_v15  ;;  %3009 = vmatprep.subr.bf16.mxu0 %v3378_v16  ;;  %v679_v49 = vpack.c.bf16 %v623_v47, %v619_v46  ;;  %v625_v54 = vld [vmem:[%s3863_s20 + $0x88] sm:$0xff]  ;;  %v627_v56 = vld [vmem:[%s3863_s20 + $0x98] sm:$0xff]  ;;  %v676_v58 = vpack.c.bf16 %v620_v51, %v616_v50  ;;  %v678_v59 = vpack.c.bf16 %v622_v53, %v618_v52  ;;  %v624_v62 = vld [vmem:[%s3863_s20 + $0x80] sm:$0xff] }
  0x2e   : > { %3073 = vmatprep.subr.bf16.mxu1 %v3379_v17  ;;  %1096 = vmatprep.mubr.bf16.mxu1 %v675_v39  ;;  %v629_v55 = vld [vmem:[%s3863_s20 + $0xa8] sm:$0xff]  ;;  %v631_v57 = vld [vmem:[%s3863_s20 + $0xb8] sm:$0xff]  ;;  %v628_v63 = vld [vmem:[%s3863_s20 + $0xa0] sm:$0xff] }
  0x2f   : > { %v681_v60 = vpack.c.bf16 %v629_v55, %v625_v54  ;;  %v683_v61 = vpack.c.bf16 %v631_v57, %v627_v56  ;;  %v626_v0 = vld [vmem:[%s3863_s20 + $0x90] sm:$0xff]  ;;  %v633_v2 = vld [vmem:[%s3863_s20 + $0xc8] sm:$0xff]  ;;  %v635_v4 = vld [vmem:[%s3863_s20 + $0xd8] sm:$0xff]  ;;  %v680_v6 = vpack.c.bf16 %v628_v63, %v624_v62 }
  0x30   : > { %3010 = vmatpush3.bf16.msra.mxu0 %v3380_v18  ;;  %v630_v1 = vld [vmem:[%s3863_s20 + $0xb0] sm:$0xff]  ;;  %v637_v3 = vld [vmem:[%s3863_s20 + $0xe8] sm:$0xff]  ;;  %v639_v5 = vld [vmem:[%s3863_s20 + $0xf8] sm:$0xff] }
  0x31   : > { %3074 = vmatpush3.bf16.msra.mxu1 %v3381_v19  ;;  %3011 = vmatprep.subr.bf16.mxu0 %v3382_v20  ;;  %v682_v7 = vpack.c.bf16 %v630_v1, %v626_v0  ;;  %v685_v8 = vpack.c.bf16 %v637_v3, %v633_v2  ;;  %v687_v9 = vpack.c.bf16 %v639_v5, %v635_v4  ;;  %v632_v10 = vld [vmem:[%s3863_s20 + $0xc0] sm:$0xff]  ;;  %v634_v12 = vld [vmem:[%s3863_s20 + $0xd0] sm:$0xff]  ;;  %v641_v14 = vld [vmem:[%s3863_s20 + $0x108] sm:$0xff] }
  0x32   : > { %3075 = vmatprep.subr.bf16.mxu1 %v3383_v21  ;;  %v636_v11 = vld [vmem:[%s3863_s20 + $0xe0] sm:$0xff]  ;;  %v638_v13 = vld [vmem:[%s3863_s20 + $0xf0] sm:$0xff]  ;;  %v645_v15 = vld [vmem:[%s3863_s20 + $0x128] sm:$0xff] }
  0x33   : > { %v643_v16 = vld [vmem:[%s3863_s20 + $0x118] sm:$0xff]  ;;  %v684_v18 = vpack.c.bf16 %v636_v11, %v632_v10  ;;  %v686_v19 = vpack.c.bf16 %v638_v13, %v634_v12  ;;  %v689_v20 = vpack.c.bf16 %v645_v15, %v641_v14  ;;  %v648_v34 = vld [vmem:[%s3863_s20 + $0x140] sm:$0xff]  ;;  %v650_v36 = vld [vmem:[%s3863_s20 + $0x150] sm:$0xff] }
  0x34   : > { %3012 = vmatpush3.bf16.msra.mxu0 %v3384_v22  ;;  %v647_v17 = vld [vmem:[%s3863_s20 + $0x138] sm:$0xff]  ;;  %v640_v22 = vld [vmem:[%s3863_s20 + $0x100] sm:$0xff]  ;;  %v654_v37 = vld [vmem:[%s3863_s20 + $0x170] sm:$0xff] }
  0x35   : > { %3076 = vmatpush3.bf16.msra.mxu1 %v3385_v23  ;;  %3013 = vmatprep.subr.bf16.mxu0 %v3386_v24  ;;  %v691_v21 = vpack.c.bf16 %v647_v17, %v643_v16  ;;  %v644_v23 = vld [vmem:[%s3863_s20 + $0x120] sm:$0xff]  ;;  %v642_v24 = vld [vmem:[%s3863_s20 + $0x110] sm:$0xff]  ;;  %v657_v38 = vld [vmem:[%s3863_s20 + $0x188] sm:$0xff]  ;;  %v694_v43 = vpack.c.bf16 %v654_v37, %v650_v36 }
  0x36   : > { %3077 = vmatprep.subr.bf16.mxu1 %v3387_v25  ;;  %v646_v25 = vld [vmem:[%s3863_s20 + $0x130] sm:$0xff]  ;;  %v652_v35 = vld [vmem:[%s3863_s20 + $0x160] sm:$0xff]  ;;  %v661_v39 = vld [vmem:[%s3863_s20 + $0x1a8] sm:$0xff] }
  0x37   : > { %v663_v41 = vld [vmem:[%s3863_s20 + $0x1b8] sm:$0xff]  ;;  %v692_v42 = vpack.c.bf16 %v652_v35, %v648_v34  ;;  %v656_v46 = vld [vmem:[%s3863_s20 + $0x180] sm:$0xff]  ;;  %v665_v50 = vld [vmem:[%s3863_s20 + $0x1c8] sm:$0xff] }
  0x38   : > { %3014 = vmatpush3.bf16.msra.mxu0 %v3388_v26  ;;  %v649_v26 = vld [vmem:[%s3863_s20 + $0x148] sm:$0xff]  ;;  %v660_v47 = vld [vmem:[%s3863_s20 + $0x1a0] sm:$0xff]  ;;  %v667_v52 = vld [vmem:[%s3863_s20 + $0x1d8] sm:$0xff] }
  0x39   : > { %3078 = vmatpush3.bf16.msra.mxu1 %v3389_v27  ;;  %3015 = vmatprep.subr.bf16.mxu0 %v3390_v28  ;;  %v653_v27 = vld [vmem:[%s3863_s20 + $0x168] sm:$0xff]  ;;  %v651_v28 = vld [vmem:[%s3863_s20 + $0x158] sm:$0xff]  ;;  %v696_v54 = vpack.c.bf16 %v660_v47, %v656_v46  ;;  %v3938_v2 = vld [vmem:[%s4852_s27] ss:$0 sm:$0xff] }
  0x3a   : > { %3079 = vmatprep.subr.bf16.mxu1 %v3391_v29  ;;  %v655_v29 = vld [vmem:[%s3863_s20 + $0x178] sm:$0xff]  ;;  %v693_v32 = vpack.c.bf16 %v653_v27, %v649_v26  ;;  %v669_v51 = vld [vmem:[%s3863_s20 + $0x1e8] sm:$0xff] }
  0x3b   : > { %v695_v33 = vpack.c.bf16 %v655_v29, %v651_v28  ;;  %v671_v53 = vld [vmem:[%s3863_s20 + $0x1f8] sm:$0xff]  ;;  %v701_v56 = vpack.c.bf16 %v669_v51, %v665_v50 }
  0x3c   : > { %3016 = vmatpush3.bf16.msra.mxu0 %v3392_v30  ;;  %v688_v30 = vpack.c.bf16 %v644_v23, %v640_v22  ;;  %v703_v57 = vpack.c.bf16 %v671_v53, %v667_v52 }
  0x3d   : > { %3080 = vmatpush3.bf16.msra.mxu1 %v3393_v31  ;;  %v690_v31 = vpack.c.bf16 %v646_v25, %v642_v24 }
  0x3f   : > { %1000 = vmatmul.mubr.bf16.vlgmr.msra.gmra.mrb[0].mxu0 %v672_v40  ;;  %v659_v40 = vld [vmem:[%s3863_s20 + $0x198] sm:$0xff] }
  0x40   : > { %1097 = vmatmul.mubr.bf16.vlgmr.msra.gmra.mrb[0].mxu1 %v674_v44  ;;  %1007 = vmatprep.mubr.bf16.mxu0 %v677_v48  ;;  %v697_v44 = vpack.c.bf16 %v661_v39, %v657_v38  ;;  %v699_v45 = vpack.c.bf16 %v663_v41, %v659_v40  ;;  %v658_v48 = vld [vmem:[%s3863_s20 + $0x190] sm:$0xff] }
  0x41   : > { %1104 = vmatprep.mubr.bf16.mxu1 %v679_v49  ;;  %v662_v49 = vld [vmem:[%s3863_s20 + $0x1b0] sm:$0xff] }
  0x42   : > { %v698_v55 = vpack.c.bf16 %v662_v49, %v658_v48 }
  0x47   : > { %1008 = vmatmul.mubr.bf16.gmra.mrb[4].mxu0 %v676_v58  ;;  %v664_v58 = vld [vmem:[%s3863_s20 + $0x1c0] sm:$0xff] }
  0x48   : > { %1105 = vmatmul.mubr.bf16.gmra.mrb[4].mxu1 %v678_v59  ;;  %1015 = vmatprep.mubr.bf16.mxu0 %v681_v60  ;;  %v668_v59 = vld [vmem:[%s3863_s20 + $0x1e0] sm:$0xff]  ;;  %v666_v60 = vld [vmem:[%s3863_s20 + $0x1d0] sm:$0xff] }
  0x49   : > { %1112 = vmatprep.mubr.bf16.mxu1 %v683_v61  ;;  %v670_v61 = vld [vmem:[%s3863_s20 + $0x1f0] sm:$0xff]  ;;  %v700_v62 = vpack.c.bf16 %v668_v59, %v664_v58  ;;  %s2913_s20 = sshll.u32 %s596_s23, 7 }
  0x4a   : > { %v702_v63 = vpack.c.bf16 %v670_v61, %v666_v60  ;;  %s4739_s0 = scalar_lea.vmem [#allocation2], %s2913_s20  ;;  %s3618_s20 = smov [#allocation2]  }
  0x4b   : > { %s2847_s19 = sshll.u32 %s4739_s0, 4  ;;  %s3558_s21 = sshll.u32 %s3618_s20, 4  ;;  %s4761_s19 = int_to_ptr.vmem [resolvable:$true] %s2847_s19  ;;  %s3559_s21 = int_to_ptr.vmem [resolvable:$false] %s3558_s21 }
  0x4c   : > { %s3554_s25 = scalar_lea.vmem %s4761_s19, 2048  ;;  %p3561_p0 = scmp.lt.s32.totalorder %s4761_s19, %s3559_s21 }
  0x4d   : > { %p3555_p11 = scmp.ne.s32.totalorder %s4761_s19, %s3554_s25 }
  0x4f   : > { %1016 = vmatmul.mubr.bf16.gmra.mrb[8].mxu0 %v680_v6  ;;  %p3556_p12 = pnand %p3555_p11, %p3759_p5 }
  0x50   : > { %1113 = vmatmul.mubr.bf16.gmra.mrb[8].mxu1 %v682_v7  ;;  %1023 = vmatprep.mubr.bf16.mxu0 %v685_v8 }
  0x51   : > { %1120 = vmatprep.mubr.bf16.mxu1 %v687_v9  ;;  %p3557_p13 = pneg %p3556_p12 }
  0x57   : > { %1024 = vmatmul.mubr.bf16.gmra.mrb[12].mxu0 %v684_v18 }
  0x58   : > { %1121 = vmatmul.mubr.bf16.gmra.mrb[12].mxu1 %v686_v19  ;;  %1031 = vmatprep.mubr.bf16.mxu0 %v689_v20 }
  0x59   : > { %1128 = vmatprep.mubr.bf16.mxu1 %v691_v21 }
  0x5f   : > { %1032 = vmatmul.mubr.bf16.gmra.mrb[16].mxu0 %v688_v30 }
  0x60   : > { %1129 = vmatmul.mubr.bf16.gmra.mrb[16].mxu1 %v690_v31  ;;  %1039 = vmatprep.mubr.bf16.mxu0 %v693_v32 }
  0x61   : > { %1136 = vmatprep.mubr.bf16.mxu1 %v695_v33 }
  0x67   : > { %1040 = vmatmul.mubr.bf16.gmra.mrb[20].mxu0 %v692_v42 }
  0x68   : > { %1137 = vmatmul.mubr.bf16.gmra.mrb[20].mxu1 %v694_v43  ;;  %1047 = vmatprep.mubr.bf16.mxu0 %v697_v44 }
  0x69   : > { %1144 = vmatprep.mubr.bf16.mxu1 %v699_v45 }
  0x6f   : > { %1048 = vmatmul.mubr.bf16.gmra.mrb[24].mxu0 %v696_v54 }
  0x70   : > { %1145 = vmatmul.mubr.bf16.gmra.mrb[24].mxu1 %v698_v55  ;;  %1055 = vmatprep.mubr.bf16.mxu0 %v701_v56 }
  0x71   : > { %1152 = vmatprep.mubr.bf16.mxu1 %v703_v57 }
  0x77   : > { %1056 = vmatmul.mubr.bf16.gmra.mrb[28].mxu0 %v700_v62 }
  0x78   : > { %1153 = vmatmul.mubr.bf16.gmra.mrb[28].mxu1 %v702_v63 }
 0x112   : > { %v3017_v0 = vpop.f32.mrb[0].mxu0 }
 0x113   : > { %v3081_v1 = vpop.f32.mrb[0].mxu1  ;;  %v3018_v3 = vpop.f32.mrb[1].mxu0 }
 0x114   : > { %v3019_v4 = vadd.f32 %v3018_v3, %v3017_v0  ;;  %v3082_v5 = vpop.f32.mrb[1].mxu1  ;;  %v3020_v6 = vpop.f32.mrb[2].mxu0 }
 0x115   : > { %v3083_v7 = vadd.f32 %v3082_v5, %v3081_v1  ;;  %v3084_v8 = vpop.f32.mrb[2].mxu1  ;;  %v3021_v9 = vpop.f32.mrb[3].mxu0 }
 0x116   : > { %v1002_v10 = vadd.f32 %v3019_v4, %v3938_v2  ;;  %v3022_v11 = vadd.f32 %v3021_v9, %v3020_v6  ;;  %v3085_v12 = vpop.f32.mrb[3].mxu1 }
 0x117   : > { %v3086_v13 = vadd.f32 %v3085_v12, %v3084_v8 }
 0x118   : > { %v1005_v14 = vadd.f32 %v3022_v11, %v3938_v2  ;;  %v3942_v15 = vadd.f32 %v3083_v7, %v1002_v10 }
 0x11a   : > { %v3023_v16 = vpop.f32.mrb[4].mxu0  ;;  %1163 = vadd.xlane.f32.xlu0 %v3942_v15  ;;  %v3945_v17 = vadd.f32 %v3086_v13, %v1005_v14 }
 0x11b   : > { %v3087_v18 = vpop.f32.mrb[4].mxu1  ;;  %v3024_v19 = vpop.f32.mrb[5].mxu0 }
 0x11c   : > { %v3025_v20 = vadd.f32 %v3024_v19, %v3023_v16  ;;  %v3088_v21 = vpop.f32.mrb[5].mxu1  ;;  %v3026_v22 = vpop.f32.mrb[6].mxu0 }
 0x11d   : > { %v3089_v23 = vadd.f32 %v3088_v21, %v3087_v18  ;;  %v3090_v24 = vpop.f32.mrb[6].mxu1  ;;  %v3027_v25 = vpop.f32.mrb[7].mxu0 }
 0x11e   : > { %v1010_v26 = vadd.f32 %v3025_v20, %v3938_v2  ;;  %v3028_v27 = vadd.f32 %v3027_v25, %v3026_v22  ;;  %v3091_v28 = vpop.f32.mrb[7].mxu1  ;;  %1165 = vadd.xlane.f32.xlu0 %v3945_v17 }
 0x11f   : > { %v3092_v29 = vadd.f32 %v3091_v28, %v3090_v24 }
 0x120   : > { %v1013_v30 = vadd.f32 %v3028_v27, %v3938_v2  ;;  %v3950_v31 = vadd.f32 %v3089_v23, %v1010_v26 }
 0x122   : > { %v3029_v32 = vpop.f32.mrb[8].mxu0  ;;  %1167 = vadd.xlane.f32.xlu1 %v3950_v31  ;;  %v3953_v33 = vadd.f32 %v3092_v29, %v1013_v30 }
 0x123   : > { %v3093_v34 = vpop.f32.mrb[8].mxu1  ;;  %v3030_v35 = vpop.f32.mrb[9].mxu0 }
 0x124   : > { %v3031_v36 = vadd.f32 %v3030_v35, %v3029_v32  ;;  %v3094_v37 = vpop.f32.mrb[9].mxu1  ;;  %v3032_v38 = vpop.f32.mrb[10].mxu0 }
 0x125   : > { %v3095_v39 = vadd.f32 %v3094_v37, %v3093_v34  ;;  %v3096_v40 = vpop.f32.mrb[10].mxu1  ;;  %v3033_v41 = vpop.f32.mrb[11].mxu0 }
 0x126   : > { %v1018_v42 = vadd.f32 %v3031_v36, %v3938_v2  ;;  %v3034_v43 = vadd.f32 %v3033_v41, %v3032_v38  ;;  %v3097_v44 = vpop.f32.mrb[11].mxu1  ;;  %1169 = vadd.xlane.f32.xlu1 %v3953_v33 }
 0x127   : > { %v3098_v45 = vadd.f32 %v3097_v44, %v3096_v40 }
 0x128   : > { %v1021_v46 = vadd.f32 %v3034_v43, %v3938_v2  ;;  %v3958_v47 = vadd.f32 %v3095_v39, %v1018_v42 }
 0x12a   : > { %v3035_v48 = vpop.f32.mrb[12].mxu0  ;;  %1171 = vadd.xlane.f32.xlu0 %v3958_v47  ;;  %v3961_v49 = vadd.f32 %v3098_v45, %v1021_v46 }
 0x12b   : > { %v3099_v50 = vpop.f32.mrb[12].mxu1  ;;  %v3036_v51 = vpop.f32.mrb[13].mxu0 }
 0x12c   : > { %v3037_v52 = vadd.f32 %v3036_v51, %v3035_v48  ;;  %v3100_v53 = vpop.f32.mrb[13].mxu1  ;;  %v3038_v54 = vpop.f32.mrb[14].mxu0  ;;  %1173 = vadd.xlane.f32.xlu1 %v3961_v49 }
 0x12d   : > { %v3101_v55 = vadd.f32 %v3100_v53, %v3099_v50  ;;  %v3102_v56 = vpop.f32.mrb[14].mxu1  ;;  %v3039_v57 = vpop.f32.mrb[15].mxu0 }
 0x12e   : > { %v1026_v58 = vadd.f32 %v3037_v52, %v3938_v2  ;;  %v3040_v59 = vadd.f32 %v3039_v57, %v3038_v54  ;;  %v3103_v60 = vpop.f32.mrb[15].mxu1 }
 0x12f   : > { %v3104_v61 = vadd.f32 %v3103_v60, %v3102_v56 }
 0x130   : > { %v1029_v62 = vadd.f32 %v3040_v59, %v3938_v2  ;;  %v3966_v63 = vadd.f32 %v3101_v55, %v1026_v58 }
 0x132   : > { %v3041_v0 = vpop.f32.mrb[16].mxu0  ;;  %1175 = vadd.xlane.f32.xlu0 %v3966_v63  ;;  %v3969_v1 = vadd.f32 %v3104_v61, %v1029_v62 }
 0x133   : > { %v3105_v3 = vpop.f32.mrb[16].mxu1  ;;  %v3042_v4 = vpop.f32.mrb[17].mxu0 }
 0x134   : > { %v3043_v5 = vadd.f32 %v3042_v4, %v3041_v0  ;;  %v3106_v6 = vpop.f32.mrb[17].mxu1  ;;  %v3044_v7 = vpop.f32.mrb[18].mxu0  ;;  %1177 = vadd.xlane.f32.xlu1 %v3969_v1 }
 0x135   : > { %v3107_v8 = vadd.f32 %v3106_v6, %v3105_v3  ;;  %v3108_v9 = vpop.f32.mrb[18].mxu1  ;;  %v3045_v10 = vpop.f32.mrb[19].mxu0 }
 0x136   : > { %v1034_v11 = vadd.f32 %v3043_v5, %v3938_v2  ;;  %v3046_v12 = vadd.f32 %v3045_v10, %v3044_v7  ;;  %v3109_v13 = vpop.f32.mrb[19].mxu1 }
 0x137   : > { %v3110_v14 = vadd.f32 %v3109_v13, %v3108_v9 }
 0x138   : > { %v1037_v16 = vadd.f32 %v3046_v12, %v3938_v2  ;;  %v3974_v18 = vadd.f32 %v3107_v8, %v1034_v11  ;;  %v3394_v11 = vld [vmem:[%s4814_s5] sm:$0xff]  }
 0x139   : > { %3193 = vmatprep.subr.bf16.mxu0 %v3394_v11 }
 0x13a   : > { %v3047_v19 = vpop.f32.mrb[20].mxu0  ;;  %1179 = vadd.xlane.f32.xlu0 %v3974_v18  ;;  %v3977_v20 = vadd.f32 %v3110_v14, %v1037_v16  ;;  %3194 = vmatpush3.bf16.msra.mxu0 %v3394_v11 }
 0x13b   : > { %v3111_v21 = vpop.f32.mrb[20].mxu1  ;;  %v3048_v22 = vpop.f32.mrb[21].mxu0 }
 0x13c   : > { %v3049_v23 = vadd.f32 %v3048_v22, %v3047_v19  ;;  %v3112_v24 = vpop.f32.mrb[21].mxu1  ;;  %v3050_v25 = vpop.f32.mrb[22].mxu0  ;;  %1181 = vadd.xlane.f32.xlu1 %v3977_v20 }
 0x13d   : > { %v3113_v26 = vadd.f32 %v3112_v24, %v3111_v21  ;;  %v3114_v27 = vpop.f32.mrb[22].mxu1  ;;  %v3051_v28 = vpop.f32.mrb[23].mxu0 }
 0x13e   : > { %v1042_v29 = vadd.f32 %v3049_v23, %v3938_v2  ;;  %v3052_v30 = vadd.f32 %v3051_v28, %v3050_v25  ;;  %v3115_v32 = vpop.f32.mrb[23].mxu1 }
 0x13f   : > { %v3116_v34 = vadd.f32 %v3115_v32, %v3114_v27 }
 0x140   : > { %v1045_v35 = vadd.f32 %v3052_v30, %v3938_v2  ;;  %v3982_v36 = vadd.f32 %v3113_v26, %v1042_v29 }
 0x142   : > { %v3053_v37 = vpop.f32.mrb[24].mxu0  ;;  %1183 = vadd.xlane.f32.xlu0 %v3982_v36  ;;  %v3985_v38 = vadd.f32 %v3116_v34, %v1045_v35 }
 0x143   : > { %v3117_v39 = vpop.f32.mrb[24].mxu1  ;;  %v3054_v40 = vpop.f32.mrb[25].mxu0 }
 0x144   : > { %v3055_v41 = vadd.f32 %v3054_v40, %v3053_v37  ;;  %v3118_v42 = vpop.f32.mrb[25].mxu1  ;;  %v3056_v43 = vpop.f32.mrb[26].mxu0  ;;  %1185 = vadd.xlane.f32.xlu1 %v3985_v38 }
 0x145   : > { %v3119_v44 = vadd.f32 %v3118_v42, %v3117_v39  ;;  %v3120_v45 = vpop.f32.mrb[26].mxu1  ;;  %v3057_v46 = vpop.f32.mrb[27].mxu0 }
 0x146   : > { %v1050_v48 = vadd.f32 %v3055_v41, %v3938_v2  ;;  %v3058_v50 = vadd.f32 %v3057_v46, %v3056_v43  ;;  %v3121_v51 = vpop.f32.mrb[27].mxu1  ;;  %v3395_v41 = vld [vmem:[%s4814_s5 + $0x8] sm:$0xff]  }
 0x147   : > { %v3122_v52 = vadd.f32 %v3121_v51, %v3120_v45  ;;  %3195 = vmatprep.subr.bf16.mxu0 %v3395_v41 }
 0x148   : > { %v1053_v53 = vadd.f32 %v3058_v50, %v3938_v2  ;;  %v3990_v54 = vadd.f32 %v3119_v44, %v1050_v48  ;;  %3196 = vmatpush3.bf16.msra.mxu0 %v3395_v41 }
 0x14a   : > { %v3059_v55 = vpop.f32.mrb[28].mxu0  ;;  %1187 = vadd.xlane.f32.xlu0 %v3990_v54  ;;  %v3993_v56 = vadd.f32 %v3122_v52, %v1053_v53 }
 0x14b   : > { %v3123_v57 = vpop.f32.mrb[28].mxu1  ;;  %v3060_v58 = vpop.f32.mrb[29].mxu0 }
 0x14c   : > { %v3061_v59 = vadd.f32 %v3060_v58, %v3059_v55  ;;  %v3124_v60 = vpop.f32.mrb[29].mxu1  ;;  %v3062_v61 = vpop.f32.mrb[30].mxu0  ;;  %1189 = vadd.xlane.f32.xlu1 %v3993_v56  ;;  %v3397_v55 = vld [vmem:[%s4814_s5 + $0x18] sm:$0xff]  }
 0x14d   : > { %v3125_v62 = vadd.f32 %v3124_v60, %v3123_v57  ;;  %v3126_v0 = vpop.f32.mrb[30].mxu1  ;;  %v3063_v3 = vpop.f32.mrb[31].mxu0 }
 0x14e   : > { %v1058_v4 = vadd.f32 %v3061_v59, %v3938_v2  ;;  %v3064_v5 = vadd.f32 %v3063_v3, %v3062_v61  ;;  %v3127_v6 = vpop.f32.mrb[31].mxu1  ;;  %v3398_v59 = vld [vmem:[%s4814_s5 + $0x20] sm:$0xff]   ;;  %v3399_v3 = vld [vmem:[%s4814_s5 + $0x28] sm:$0xff]  }
 0x14f   : > { %v3128_v7 = vadd.f32 %v3127_v6, %v3126_v0  ;;  %v3400_v6 = vld [vmem:[%s4814_s5 + $0x30] sm:$0xff]  }
 0x150   : > { %v1061_v8 = vadd.f32 %v3064_v5, %v3938_v2  ;;  %v3998_v9 = vadd.f32 %v3125_v62, %v1058_v4 }
 0x152   : > { %1191 = vadd.xlane.f32.xlu0 %v3998_v9  ;;  %v4001_v10 = vadd.f32 %v3128_v7, %v1061_v8 }
 0x154   : > { %1193 = vadd.xlane.f32.xlu1 %v4001_v10 }
 0x1a7   : > { %v1164_v12 = vpop.xlane.xlu0 %1163 }
 0x1a8   : > { %v1195_v13 = vmul.f32 0.0078125, %v1164_v12 }
 0x1aa   : > { %v4008_v14 = vsub.f32 %v3942_v15, %v1195_v13  ;;  %v3401_v13 = vld [vmem:[%s4814_s5 + $0x38] sm:$0xff]  }
 0x1ab   : > { %v1166_v2 = vpop.xlane.xlu0 %1165 }
 0x1ac   : > { %v1196_v16 = vmul.f32 0.0078125, %v1166_v2  ;;  %v1227_v19 = vmul.f32 %v4008_v14, %v4008_v14 }
 0x1ae   : > { %1243 = vadd.xlane.f32.xlu0 %v1227_v19  ;;  %v4013_v21 = vsub.f32 %v3945_v17, %v1196_v16 }
 0x1af   : > { %v1168_v22 = vpop.xlane.xlu1 %1167 }
 0x1b0   : > { %v1197_v23 = vmul.f32 0.0078125, %v1168_v22  ;;  %v1228_v24 = vmul.f32 %v4013_v21, %v4013_v21 }
 0x1b2   : > { %1245 = vadd.xlane.f32.xlu1 %v1228_v24  ;;  %v4018_v25 = vsub.f32 %v3950_v31, %v1197_v23 }
 0x1b3   : > { %v1170_v15 = vpop.xlane.xlu1 %1169 }
 0x1b4   : > { %v1198_v26 = vmul.f32 0.0078125, %v1170_v15  ;;  %v1229_v27 = vmul.f32 %v4018_v25, %v4018_v25 }
 0x1b6   : > { %1247 = vadd.xlane.f32.xlu0 %v1229_v27  ;;  %v4023_v28 = vsub.f32 %v3953_v33, %v1198_v26 }
 0x1b7   : > { %v1172_v17 = vpop.xlane.xlu0 %1171 }
 0x1b8   : > { %v1199_v29 = vmul.f32 0.0078125, %v1172_v17  ;;  %v1230_v30 = vmul.f32 %v4023_v28, %v4023_v28 }
 0x1b9   : > { %v1174_v32 = vpop.xlane.xlu1 %1173 }
 0x1ba   : > { %v1200_v34 = vmul.f32 0.0078125, %v1174_v32  ;;  %1249 = vadd.xlane.f32.xlu1 %v1230_v30  ;;  %v4028_v31 = vsub.f32 %v3958_v47, %v1199_v29 }
 0x1bc   : > { %v1231_v35 = vmul.f32 %v4028_v31, %v4028_v31  ;;  %v4033_v37 = vsub.f32 %v3961_v49, %v1200_v34 }
 0x1be   : > { %1251 = vadd.xlane.f32.xlu0 %v1231_v35  ;;  %v1232_v33 = vmul.f32 %v4033_v37, %v4033_v37 }
 0x1bf   : > { %v1176_v39 = vpop.xlane.xlu0 %1175 }
 0x1c0   : > { %v1201_v40 = vmul.f32 0.0078125, %v1176_v39  ;;  %1253 = vadd.xlane.f32.xlu1 %v1232_v33 }
 0x1c1   : > { %v1178_v42 = vpop.xlane.xlu1 %1177 }
 0x1c2   : > { %v1202_v47 = vmul.f32 0.0078125, %v1178_v42  ;;  %v4041_v43 = vsub.f32 %v3966_v63, %v1201_v40  ;;  %v3396_v63 = vld [vmem:[%s4814_s5 + $0x10] sm:$0xff]   ;;  %v4111_v40 = vld [vmem:[%s4853_s24] ss:$0 sm:$0xff]  ;;  %s3560_s24 = scalar_lea.vmem %s3559_s21, 4096 }
 0x1c3   : > { %3197 = vmatprep.subr.bf16.mxu0 %v3396_v63  ;;  %p3562_p1 = scmp.lt.s32.totalorder %s3560_s24, %s3554_s25 }
 0x1c4   : > { %v1233_v49 = vmul.f32 %v4041_v43, %v4041_v43  ;;  %v4046_v44 = vsub.f32 %v3969_v1, %v1202_v47  ;;  %3198 = vmatpush3.bf16.msra.mxu0 %v3396_v63 }
 0x1c5   : > { %3199 = vmatprep.subr.bf16.mxu0 %v3397_v55  ;;  %p3563_p2 = por %p3562_p1, %p3561_p0 }
 0x1c6   : > { %1255 = vadd.xlane.f32.xlu0 %v1233_v49  ;;  %v1234_v45 = vmul.f32 %v4046_v44, %v4046_v44 }
 0x1c7   : > { %v1180_v46 = vpop.xlane.xlu0 %1179  ;;  %p3564_p3 = pnand %p3563_p2, %p3557_p13 }
 0x1c8   : > { %v1203_v48 = vmul.f32 0.0078125, %v1180_v46  ;;  %1257 = vadd.xlane.f32.xlu1 %v1234_v45  ;;  %3200 = vmatpush3.bf16.msra.mxu0 %v3397_v55 }
 0x1c9   : > { %v1182_v50 = vpop.xlane.xlu1 %1181  ;;  %3201 = vmatprep.subr.bf16.mxu0 %v3398_v59 }
 0x1ca   : > { %v1204_v51 = vmul.f32 0.0078125, %v1182_v50  ;;  %v4054_v52 = vsub.f32 %v3974_v18, %v1203_v48 }
 0x1cc   : > { %v1235_v1 = vmul.f32 %v4054_v52, %v4054_v52  ;;  %v4059_v53 = vsub.f32 %v3977_v20, %v1204_v51  ;;  %3202 = vmatpush3.bf16.msra.mxu0 %v3398_v59  ;;  %v4118_v51 = vld [vmem:[%s4813_s4] ss:$0 sm:$0xff] }
 0x1cd   : > { %3203 = vmatprep.subr.bf16.mxu0 %v3399_v3 }
 0x1ce   : > { %1259 = vadd.xlane.f32.xlu0 %v1235_v1  ;;  %v1236_v57 = vmul.f32 %v4059_v53, %v4059_v53 }
 0x1cf   : > { %v1184_v58 = vpop.xlane.xlu0 %1183 }
 0x1d0   : > { %v1205_v18 = vmul.f32 0.0078125, %v1184_v58  ;;  %1261 = vadd.xlane.f32.xlu1 %v1236_v57  ;;  %3204 = vmatpush3.bf16.msra.mxu0 %v3399_v3 }
 0x1d1   : > { %v1186_v60 = vpop.xlane.xlu1 %1185  ;;  %3205 = vmatprep.subr.bf16.mxu0 %v3400_v6 }
 0x1d2   : > { %v1206_v20 = vmul.f32 0.0078125, %v1186_v60  ;;  %v4070_v61 = vsub.f32 %v3982_v36, %v1205_v18 }
 0x1d4   : > { %v1237_v62 = vmul.f32 %v4070_v61, %v4070_v61  ;;  %v4075_v0 = vsub.f32 %v3985_v38, %v1206_v20  ;;  %3206 = vmatpush3.bf16.msra.mxu0 %v3400_v6 }
 0x1d5   : > { %3207 = vmatprep.subr.bf16.mxu0 %v3401_v13 }
 0x1d6   : > { %1263 = vadd.xlane.f32.xlu0 %v1237_v62  ;;  %v1238_v4 = vmul.f32 %v4075_v0, %v4075_v0 }
 0x1d7   : > { %v1188_v5 = vpop.xlane.xlu0 %1187 }
 0x1d8   : > { %v1207_v36 = vmul.f32 0.0078125, %v1188_v5  ;;  %1265 = vadd.xlane.f32.xlu1 %v1238_v4  ;;  %3208 = vmatpush3.bf16.msra.mxu0 %v3401_v13 }
 0x1d9   : > { %v1190_v7 = vpop.xlane.xlu1 %1189 }
 0x1da   : > { %v1208_v38 = vmul.f32 0.0078125, %v1190_v7  ;;  %v4086_v8 = vsub.f32 %v3990_v54, %v1207_v36 }
 0x1dc   : > { %v1239_v11 = vmul.f32 %v4086_v8, %v4086_v8  ;;  %v4091_v12 = vsub.f32 %v3993_v56, %v1208_v38 }
 0x1de   : > { %1267 = vadd.xlane.f32.xlu0 %v1239_v11  ;;  %v1240_v2 = vmul.f32 %v4091_v12, %v4091_v12 }
 0x1df   : > { %v1192_v16 = vpop.xlane.xlu0 %1191 }
 0x1e0   : > { %v1209_v54 = vmul.f32 0.0078125, %v1192_v16  ;;  %1269 = vadd.xlane.f32.xlu1 %v1240_v2 }
 0x1e1   : > { %v1194_v19 = vpop.xlane.xlu1 %1193 }
 0x1e2   : > { %v1210_v22 = vmul.f32 0.0078125, %v1194_v19  ;;  %v4099_v23 = vsub.f32 %v3998_v9, %v1209_v54 }
 0x1e4   : > { %v1241_v56 = vmul.f32 %v4099_v23, %v4099_v23  ;;  %v4104_v24 = vsub.f32 %v4001_v10, %v1210_v22 }
 0x1e6   : > { %1271 = vadd.xlane.f32.xlu0 %v1241_v56  ;;  %v1242_v15 = vmul.f32 %v4104_v24, %v4104_v24 }
 0x1e8   : > { %1273 = vadd.xlane.f32.xlu1 %v1242_v15 }
 0x23b   : > { %v1244_v26 = vpop.xlane.xlu0 %1243 }
 0x23c   : > { %v1275_v27 = vmul.f32 0.0078125, %v1244_v26 }
 0x23e   : > { %v1291_v17 = vadd.f32 1e-05, %v1275_v27 }
 0x23f   : > { %v1246_v29 = vpop.xlane.xlu1 %1245 }
 0x240   : > { %3426 = vrsqrt.f32 %v1291_v17  ;;  %v1276_v30 = vmul.f32 0.0078125, %v1246_v29 }
 0x242   : > { %v1292_v32 = vadd.f32 1e-05, %v1276_v30 }
 0x243   : > { %v1248_v9 = vpop.xlane.xlu0 %1247 }
 0x244   : > { %3428 = vrsqrt.f32 %v1292_v32  ;;  %v1277_v34 = vmul.f32 0.0078125, %v1248_v9 }
 0x246   : > { %v1293_v35 = vadd.f32 1e-05, %v1277_v34 }
 0x247   : > { %v1250_v33 = vpop.xlane.xlu1 %1249 }
 0x248   : > { %3430 = vrsqrt.f32 %v1293_v35  ;;  %v1278_v10 = vmul.f32 0.0078125, %v1250_v33 }
 0x24a   : > { %v3427_v39 = vpop.eup %3426  ;;  %v1294_v41 = vadd.f32 1e-05, %v1278_v10 }
 0x24b   : > { %v1252_v42 = vpop.xlane.xlu0 %1251  ;;  %v1323_v47 = vmul.f32 %v3427_v39, %v4008_v14 }
 0x24c   : > { %3432 = vrsqrt.f32 %v1294_v41  ;;  %v1279_v49 = vmul.f32 0.0078125, %v1252_v42 }
 0x24d   : > { %v1254_v45 = vpop.xlane.xlu1 %1253  ;;  %v1345_v46 = vmul.f32 %v4111_v40, %v1323_v47 }
 0x24e   : > { %v3429_v48 = vpop.eup %3428  ;;  %v1295_v63 = vadd.f32 1e-05, %v1279_v49  ;;  %v1280_v50 = vmul.f32 0.0078125, %v1254_v45 }
 0x24f   : > { %v1324_v1 = vmul.f32 %v3429_v48, %v4013_v21  ;;  %v1367_v14 = vadd.f32 %v4118_v51, %v1345_v46 }
 0x250   : > { %3434 = vrsqrt.f32 %v1295_v63  ;;  %v1296_v55 = vadd.f32 1e-05, %v1280_v50 }
 0x251   : > { %v1346_v57 = vmul.f32 %v4111_v40, %v1324_v1  ;;  %v1383_v4 = vmax.f32 %v1367_v14, 0.0 }
 0x252   : > { %v3431_v58 = vpop.eup %3430  ;;  %3436 = vrsqrt.f32 %v1296_v55 }
 0x253   : > { %v1325_v18 = vmul.f32 %v3431_v58, %v4018_v25  ;;  %v1256_v59 = vpop.xlane.xlu0 %1255  ;;  %v1368_v60 = vadd.f32 %v4118_v51, %v1346_v57 }
 0x254   : > { %v1281_v20 = vmul.f32 0.0078125, %v1256_v59 }
 0x255   : > { %v1347_v62 = vmul.f32 %v4111_v40, %v1325_v18  ;;  %v1258_v3 = vpop.xlane.xlu1 %1257  ;;  %v1384_v5 = vmax.f32 %v1368_v60, 0.0 }
 0x256   : > { %v3433_v21 = vpop.eup %3432  ;;  %v1297_v36 = vadd.f32 1e-05, %v1281_v20  ;;  %v1282_v6 = vmul.f32 0.0078125, %v1258_v3 }
 0x257   : > { %v1326_v7 = vmul.f32 %v3433_v21, %v4023_v28  ;;  %v1399_v38 = vpack.c.bf16 %v1384_v5, %v1383_v4  ;;  %v1369_v25 = vadd.f32 %v4118_v51, %v1347_v62 }
 0x258   : > { %3438 = vrsqrt.f32 %v1297_v36  ;;  %v1298_v11 = vadd.f32 1e-05, %v1282_v6 }
 0x259   : > { %v1348_v13 = vmul.f32 %v4111_v40, %v1326_v7  ;;  %3209 = vmatprep.mubr.bf16.mxu0 %v1399_v38  ;;  %v1385_v26 = vmax.f32 %v1369_v25, 0.0 }
 0x25a   : > { %v3435_v2 = vpop.eup %3434  ;;  %3440 = vrsqrt.f32 %v1298_v11 }
 0x25b   : > { %v1260_v16 = vpop.xlane.xlu0 %1259  ;;  %v1370_v54 = vadd.f32 %v4118_v51, %v1348_v13  ;;  %v1327_v19 = vmul.f32 %v3435_v2, %v4028_v31 }
 0x25c   : > { %v3437_v22 = vpop.eup %3436  ;;  %v1283_v56 = vmul.f32 0.0078125, %v1260_v16 }
 0x25d   : > { %v1262_v15 = vpop.xlane.xlu1 %1261  ;;  %v1386_v28 = vmax.f32 %v1370_v54, 0.0  ;;  %v1328_v27 = vmul.f32 %v3437_v22, %v4033_v37  ;;  %v1349_v17 = vmul.f32 %v4111_v40, %v1327_v19 }
 0x25e   : > { %v1299_v29 = vadd.f32 1e-05, %v1283_v56  ;;  %v1284_v30 = vmul.f32 0.0078125, %v1262_v15 }
 0x25f   : > { %v1400_v32 = vpack.c.bf16 %v1386_v28, %v1385_v26  ;;  %v1350_v9 = vmul.f32 %v4111_v40, %v1328_v27  ;;  %v1371_v34 = vadd.f32 %v4118_v51, %v1349_v17 }
 0x260   : > { %3442 = vrsqrt.f32 %v1299_v29  ;;  %v1300_v35 = vadd.f32 1e-05, %v1284_v30 }
 0x261   : > { %3210 = vmatmul.mubr.bf16.vlgmr.msra.gmra.mrb[32].mxu0 %v1400_v32  ;;  %v1372_v31 = vadd.f32 %v4118_v51, %v1350_v9  ;;  %v1387_v39 = vmax.f32 %v1371_v34, 0.0 }
 0x262   : > { %v3439_v33 = vpop.eup %3438  ;;  %3444 = vrsqrt.f32 %v1300_v35 }
 0x263   : > { %v1264_v10 = vpop.xlane.xlu0 %1263  ;;  %v1388_v41 = vmax.f32 %v1372_v31, 0.0  ;;  %v1329_v37 = vmul.f32 %v3439_v33, %v4041_v43 }
 0x264   : > { %v3441_v42 = vpop.eup %3440  ;;  %v1285_v47 = vmul.f32 0.0078125, %v1264_v10 }
 0x265   : > { %v1266_v49 = vpop.xlane.xlu1 %1265  ;;  %v1401_v45 = vpack.c.bf16 %v1388_v41, %v1387_v39  ;;  %v1330_v46 = vmul.f32 %v3441_v42, %v4046_v44  ;;  %v1351_v48 = vmul.f32 %v4111_v40, %v1329_v37 }
 0x266   : > { %v1301_v63 = vadd.f32 1e-05, %v1285_v47  ;;  %v1286_v50 = vmul.f32 0.0078125, %v1266_v49 }
 0x267   : > { %3213 = vmatprep.mubr.bf16.mxu0 %v1401_v45  ;;  %v1352_v1 = vmul.f32 %v4111_v40, %v1330_v46  ;;  %v1373_v55 = vadd.f32 %v4118_v51, %v1351_v48 }
 0x268   : > { %3446 = vrsqrt.f32 %v1301_v63  ;;  %v1302_v57 = vadd.f32 1e-05, %v1286_v50 }
 0x269   : > { %v1374_v14 = vadd.f32 %v4118_v51, %v1352_v1  ;;  %v1389_v18 = vmax.f32 %v1373_v55, 0.0 }
 0x26a   : > { %v3443_v43 = vpop.eup %3442  ;;  %3448 = vrsqrt.f32 %v1302_v57 }
 0x26b   : > { %v1268_v58 = vpop.xlane.xlu0 %1267  ;;  %v1390_v59 = vmax.f32 %v1374_v14, 0.0  ;;  %v1331_v44 = vmul.f32 %v3443_v43, %v4054_v52 }
 0x26c   : > { %v3445_v60 = vpop.eup %3444  ;;  %v1287_v20 = vmul.f32 0.0078125, %v1268_v58 }
 0x26d   : > { %v1270_v62 = vpop.xlane.xlu1 %1269  ;;  %v1402_v3 = vpack.c.bf16 %v1390_v59, %v1389_v18  ;;  %v1332_v4 = vmul.f32 %v3445_v60, %v4059_v53  ;;  %v1353_v5 = vmul.f32 %v4111_v40, %v1331_v44 }
 0x26e   : > { %v1303_v21 = vadd.f32 1e-05, %v1287_v20  ;;  %v1288_v36 = vmul.f32 0.0078125, %v1270_v62 }
 0x26f   : > { %3214 = vmatmul.mubr.bf16.gmra.mrb[36].mxu0 %v1402_v3  ;;  %v1354_v6 = vmul.f32 %v4111_v40, %v1332_v4  ;;  %v1375_v7 = vadd.f32 %v4118_v51, %v1353_v5 }
 0x270   : > { %3450 = vrsqrt.f32 %v1303_v21  ;;  %v1304_v38 = vadd.f32 1e-05, %v1288_v36 }
 0x271   : > { %v1376_v11 = vadd.f32 %v4118_v51, %v1354_v6  ;;  %v1391_v25 = vmax.f32 %v1375_v7, 0.0 }
 0x272   : > { %v3447_v52 = vpop.eup %3446  ;;  %3452 = vrsqrt.f32 %v1304_v38 }
 0x273   : > { %v1272_v13 = vpop.xlane.xlu0 %1271  ;;  %v1392_v2 = vmax.f32 %v1376_v11, 0.0  ;;  %v1333_v53 = vmul.f32 %v3447_v52, %v4070_v61 }
 0x274   : > { %v3449_v16 = vpop.eup %3448  ;;  %v1289_v54 = vmul.f32 0.0078125, %v1272_v13 }
 0x275   : > { %v1274_v19 = vpop.xlane.xlu1 %1273  ;;  %v1403_v22 = vpack.c.bf16 %v1392_v2, %v1391_v25  ;;  %v1334_v56 = vmul.f32 %v3449_v16, %v4075_v0  ;;  %v1355_v15 = vmul.f32 %v4111_v40, %v1333_v53 }
 0x276   : > { %v1305_v26 = vadd.f32 1e-05, %v1289_v54  ;;  %v1290_v28 = vmul.f32 0.0078125, %v1274_v19 }
 0x277   : > { %3217 = vmatprep.mubr.bf16.mxu0 %v1403_v22  ;;  %v1356_v27 = vmul.f32 %v4111_v40, %v1334_v56  ;;  %v1377_v17 = vadd.f32 %v4118_v51, %v1355_v15 }
 0x278   : > { %3454 = vrsqrt.f32 %v1305_v26  ;;  %v1306_v29 = vadd.f32 1e-05, %v1290_v28  ;;  %v3402_v26 = vld [vmem:[%s4818_s9] sm:$0xff]   ;;  %v3403_v28 = vld [vmem:[%s4818_s9 + $0x8] sm:$0xff]  }
 0x279   : > { %v1378_v30 = vadd.f32 %v4118_v51, %v1356_v27  ;;  %v1393_v32 = vmax.f32 %v1377_v17, 0.0  ;;  %3225 = vmatprep.subr.bf16.mxu1 %v3402_v26 }
 0x27a   : > { %v3451_v61 = vpop.eup %3450  ;;  %3456 = vrsqrt.f32 %v1306_v29  ;;  %3226 = vmatpush3.bf16.msra.mxu1 %v3402_v26 }
 0x27b   : > { %v1394_v9 = vmax.f32 %v1378_v30, 0.0  ;;  %v1335_v34 = vmul.f32 %v3451_v61, %v4086_v8  ;;  %3227 = vmatprep.subr.bf16.mxu1 %v3403_v28 }
 0x27c   : > { %v3453_v0 = vpop.eup %3452 }
 0x27d   : > { %v1404_v35 = vpack.c.bf16 %v1394_v9, %v1393_v32  ;;  %v1336_v31 = vmul.f32 %v3453_v0, %v4091_v12  ;;  %v1357_v33 = vmul.f32 %v4111_v40, %v1335_v34 }
 0x27e   : > { %3228 = vmatpush3.bf16.msra.mxu1 %v3403_v28 }
 0x27f   : > { %3218 = vmatmul.mubr.bf16.gmra.mrb[40].mxu0 %v1404_v35  ;;  %v1358_v10 = vmul.f32 %v4111_v40, %v1336_v31  ;;  %v1379_v39 = vadd.f32 %v4118_v51, %v1357_v33 }
 0x281   : > { %v1380_v41 = vadd.f32 %v4118_v51, %v1358_v10  ;;  %v1395_v42 = vmax.f32 %v1379_v39, 0.0 }
 0x282   : > { %v3455_v37 = vpop.eup %3454 }
 0x283   : > { %v1396_v47 = vmax.f32 %v1380_v41, 0.0  ;;  %v1337_v49 = vmul.f32 %v3455_v37, %v4099_v23  ;;  %v2952_v23 = vld [vmem:[%s4815_s6] ss:$0 sm:$0xff] }
 0x284   : > { %v3457_v45 = vpop.eup %3456 }
 0x285   : > { %v1405_v8 = vpack.c.bf16 %v1396_v47, %v1395_v42  ;;  %v1338_v46 = vmul.f32 %v3457_v45, %v4104_v24  ;;  %v1359_v12 = vmul.f32 %v4111_v40, %v1337_v49 }
 0x287   : > { %3221 = vmatprep.mubr.bf16.mxu0 %v1405_v8  ;;  %v1360_v48 = vmul.f32 %v4111_v40, %v1338_v46  ;;  %v1381_v63 = vadd.f32 %v4118_v51, %v1359_v12 }
 0x289   : > { %v1382_v50 = vadd.f32 %v4118_v51, %v1360_v48  ;;  %v1397_v1 = vmax.f32 %v1381_v63, 0.0 }
 0x28b   : > { %v1398_v55 = vmax.f32 %v1382_v50, 0.0 }
 0x28d   : > { %v1406_v57 = vpack.c.bf16 %v1398_v55, %v1397_v1 }
 0x28f   : > { %3222 = vmatmul.mubr.bf16.gmra.mrb[44].mxu0 %v1406_v57 }
 0x334   : > { %v3211_v14 = vpop.f32.mrb[32].mxu0 }
 0x335   : > { %v1512_v43 = vpop.f32.mrb[33].mxu0  ;;  %v1521_v40 = vadd.f32 %v3211_v14, %v2952_v23 }
 0x336   : > { %v1513_v24 = vadd.f32 %v2952_v23, %v1512_v43  ;;  %v3212_v58 = vpop.f32.mrb[34].mxu0 }
 0x337   : > { %v1515_v18 = vpop.f32.mrb[35].mxu0  ;;  %v1524_v44 = vadd.f32 %v3212_v58, %v2952_v23 }
 0x338   : > { %v1516_v59 = vadd.f32 %v2952_v23, %v1515_v18  ;;  %1577 = vadd.xlane.f32.xlu0 %v1513_v24 }
 0x33a   : > { %1579 = vadd.xlane.f32.xlu1 %v1516_v59 }
 0x33c   : > { %1581 = vadd.xlane.f32.xlu0 %v1521_v40 }
 0x33e   : > { %1583 = vadd.xlane.f32.xlu1 %v1524_v44 }
 0x342   : > { %v3215_v51 = vpop.f32.mrb[36].mxu0 }
 0x343   : > { %v1528_v60 = vpop.f32.mrb[37].mxu0  ;;  %v4174_v5 = vadd.f32 %v3215_v51, %v2952_v23 }
 0x344   : > { %v4169_v20 = vadd.f32 %v2952_v23, %v1528_v60  ;;  %v3216_v62 = vpop.f32.mrb[38].mxu0 }
 0x345   : > { %v1531_v3 = vpop.f32.mrb[39].mxu0  ;;  %v4177_v21 = vadd.f32 %v3216_v62, %v2952_v23 }
 0x346   : > { %v4171_v4 = vadd.f32 %v2952_v23, %v1531_v3  ;;  %1585 = vadd.xlane.f32.xlu0 %v4169_v20 }
 0x348   : > { %1587 = vadd.xlane.f32.xlu1 %v4171_v4 }
 0x34a   : > { %1589 = vadd.xlane.f32.xlu0 %v4174_v5 }
 0x34c   : > { %1591 = vadd.xlane.f32.xlu1 %v4177_v21 }
 0x352   : > { %v3219_v36 = vpop.f32.mrb[40].mxu0 }
 0x353   : > { %v1544_v6 = vpop.f32.mrb[41].mxu0  ;;  %v4186_v13 = vadd.f32 %v3219_v36, %v2952_v23 }
 0x354   : > { %v4181_v7 = vadd.f32 %v2952_v23, %v1544_v6  ;;  %v3220_v38 = vpop.f32.mrb[42].mxu0 }
 0x355   : > { %v1547_v11 = vpop.f32.mrb[43].mxu0  ;;  %v4189_v25 = vadd.f32 %v3220_v38, %v2952_v23 }
 0x356   : > { %v4183_v52 = vadd.f32 %v2952_v23, %v1547_v11  ;;  %1593 = vadd.xlane.f32.xlu0 %v4181_v7  ;;  %v3407_v11 = vld [vmem:[%s4818_s9 + $0x28] sm:$0xff]  }
 0x358   : > { %1595 = vadd.xlane.f32.xlu1 %v4183_v52 }
 0x35a   : > { %1597 = vadd.xlane.f32.xlu0 %v4186_v13 }
 0x35c   : > { %1599 = vadd.xlane.f32.xlu1 %v4189_v25 }
 0x362   : > { %v3223_v2 = vpop.f32.mrb[44].mxu0 }
 0x363   : > { %v1560_v53 = vpop.f32.mrb[45].mxu0  ;;  %v4198_v56 = vadd.f32 %v3223_v2, %v2952_v23 }
 0x364   : > { %v4193_v16 = vadd.f32 %v2952_v23, %v1560_v53  ;;  %v3224_v54 = vpop.f32.mrb[46].mxu0 }
 0x365   : > { %v1563_v19 = vpop.f32.mrb[47].mxu0  ;;  %v4201_v15 = vadd.f32 %v3224_v54, %v2952_v23 }
 0x366   : > { %v4195_v22 = vadd.f32 %v2952_v23, %v1563_v19  ;;  %1601 = vadd.xlane.f32.xlu0 %v4193_v16 }
 0x368   : > { %1603 = vadd.xlane.f32.xlu1 %v4195_v22 }
 0x36a   : > { %1605 = vadd.xlane.f32.xlu0 %v4198_v56 }
 0x36c   : > { %1607 = vadd.xlane.f32.xlu1 %v4201_v15 }
 0x3c5   : > { %v1578_v27 = vpop.xlane.xlu0 %1577 }
 0x3c6   : > { %v1609_v17 = vmul.f32 0.0078125, %v1578_v27 }
 0x3c7   : > { %v1580_v29 = vpop.xlane.xlu1 %1579 }
 0x3c8   : > { %v4211_v30 = vsub.f32 %v1513_v24, %v1609_v17  ;;  %v1610_v61 = vmul.f32 0.0078125, %v1580_v29  ;;  %v3404_v24 = vld [vmem:[%s4818_s9 + $0x10] sm:$0xff]  }
 0x3c9   : > { %v1582_v32 = vpop.xlane.xlu0 %1581  ;;  %3229 = vmatprep.subr.bf16.mxu1 %v3404_v24 }
 0x3ca   : > { %v4213_v9 = vsub.f32 %v1516_v59, %v1610_v61  ;;  %v1611_v34 = vmul.f32 0.0078125, %v1582_v32  ;;  %v1641_v0 = vmul.f32 %v4211_v30, %v4211_v30  ;;  %3230 = vmatpush3.bf16.msra.mxu1 %v3404_v24  ;;  %v3405_v59 = vld [vmem:[%s4818_s9 + $0x18] sm:$0xff]  }
 0x3cb   : > { %v1584_v35 = vpop.xlane.xlu1 %1583  ;;  %3231 = vmatprep.subr.bf16.mxu1 %v3405_v59 }
 0x3cc   : > { %v4217_v31 = vsub.f32 %v1521_v40, %v1611_v34  ;;  %v1612_v33 = vmul.f32 0.0078125, %v1584_v35  ;;  %1657 = vadd.xlane.f32.xlu0 %v1641_v0  ;;  %v1642_v10 = vmul.f32 %v4213_v9, %v4213_v9 }
 0x3ce   : > { %v4221_v39 = vsub.f32 %v1524_v44, %v1612_v33  ;;  %1659 = vadd.xlane.f32.xlu1 %v1642_v10  ;;  %v1643_v41 = vmul.f32 %v4217_v31, %v4217_v31  ;;  %3232 = vmatpush3.bf16.msra.mxu1 %v3405_v59  ;;  %v4314_v59 = vld [vmem:[%s4817_s8] ss:$0 sm:$0xff] }
 0x3d0   : > { %1661 = vadd.xlane.f32.xlu0 %v1643_v41  ;;  %v1644_v37 = vmul.f32 %v4221_v39, %v4221_v39 }
 0x3d2   : > { %1663 = vadd.xlane.f32.xlu1 %v1644_v37 }
 0x3d3   : > { %v1586_v42 = vpop.xlane.xlu0 %1585 }
 0x3d4   : > { %v1613_v47 = vmul.f32 0.0078125, %v1586_v42 }
 0x3d5   : > { %v1588_v49 = vpop.xlane.xlu1 %1587 }
 0x3d6   : > { %v4228_v45 = vsub.f32 %v4169_v20, %v1613_v47  ;;  %v1614_v8 = vmul.f32 0.0078125, %v1588_v49 }
 0x3d7   : > { %v1590_v46 = vpop.xlane.xlu0 %1589 }
 0x3d8   : > { %v4231_v12 = vsub.f32 %v4171_v4, %v1614_v8  ;;  %v1615_v48 = vmul.f32 0.0078125, %v1590_v46  ;;  %v1645_v63 = vmul.f32 %v4228_v45, %v4228_v45  ;;  %v3406_v4 = vld [vmem:[%s4818_s9 + $0x20] sm:$0xff]  }
 0x3d9   : > { %v1592_v50 = vpop.xlane.xlu1 %1591  ;;  %3233 = vmatprep.subr.bf16.mxu1 %v3406_v4 }
 0x3da   : > { %v4236_v1 = vsub.f32 %v4174_v5, %v1615_v48  ;;  %v1616_v55 = vmul.f32 0.0078125, %v1592_v50  ;;  %1665 = vadd.xlane.f32.xlu0 %v1645_v63  ;;  %v1646_v57 = vmul.f32 %v4231_v12, %v4231_v12  ;;  %3234 = vmatpush3.bf16.msra.mxu1 %v3406_v4 }
 0x3db   : > { %3235 = vmatprep.subr.bf16.mxu1 %v3407_v11 }
 0x3dc   : > { %v4241_v23 = vsub.f32 %v4177_v21, %v1616_v55  ;;  %1667 = vadd.xlane.f32.xlu1 %v1646_v57  ;;  %v1647_v14 = vmul.f32 %v4236_v1, %v4236_v1  ;;  %v4308_v55 = vld [vmem:[%s4816_s7] ss:$0 sm:$0xff] }
 0x3de   : > { %1669 = vadd.xlane.f32.xlu0 %v1647_v14  ;;  %v1648_v43 = vmul.f32 %v4241_v23, %v4241_v23  ;;  %3236 = vmatpush3.bf16.msra.mxu1 %v3407_v11 }
 0x3e0   : > { %1671 = vadd.xlane.f32.xlu1 %v1648_v43 }
 0x3e3   : > { %v1594_v58 = vpop.xlane.xlu0 %1593 }
 0x3e4   : > { %v1617_v18 = vmul.f32 0.0078125, %v1594_v58 }
 0x3e5   : > { %v1596_v40 = vpop.xlane.xlu1 %1595 }
 0x3e6   : > { %v4254_v44 = vsub.f32 %v4181_v7, %v1617_v18  ;;  %v1618_v51 = vmul.f32 0.0078125, %v1596_v40 }
 0x3e7   : > { %v1598_v60 = vpop.xlane.xlu0 %1597 }
 0x3e8   : > { %v4257_v20 = vsub.f32 %v4183_v52, %v1618_v51  ;;  %v1619_v62 = vmul.f32 0.0078125, %v1598_v60  ;;  %v1649_v3 = vmul.f32 %v4254_v44, %v4254_v44 }
 0x3e9   : > { %v1600_v5 = vpop.xlane.xlu1 %1599 }
 0x3ea   : > { %v4265_v21 = vsub.f32 %v4186_v13, %v1619_v62  ;;  %v1620_v36 = vmul.f32 0.0078125, %v1600_v5  ;;  %1673 = vadd.xlane.f32.xlu0 %v1649_v3  ;;  %v1650_v6 = vmul.f32 %v4257_v20, %v4257_v20  ;;  %v3408_v13 = vld [vmem:[%s4818_s9 + $0x30] sm:$0xff]  }
 0x3eb   : > { %3237 = vmatprep.subr.bf16.mxu1 %v3408_v13 }
 0x3ec   : > { %v4270_v7 = vsub.f32 %v4189_v25, %v1620_v36  ;;  %1675 = vadd.xlane.f32.xlu1 %v1650_v6  ;;  %v1651_v38 = vmul.f32 %v4265_v21, %v4265_v21  ;;  %v3409_v25 = vld [vmem:[%s4818_s9 + $0x38] sm:$0xff]   ;;  %3238 = vmatpush3.bf16.msra.mxu1 %v3408_v13 }
 0x3ed   : > { %3239 = vmatprep.subr.bf16.mxu1 %v3409_v25 }
 0x3ee   : > { %1677 = vadd.xlane.f32.xlu0 %v1651_v38  ;;  %v1652_v52 = vmul.f32 %v4270_v7, %v4270_v7 }
 0x3f0   : > { %1679 = vadd.xlane.f32.xlu1 %v1652_v52  ;;  %3240 = vmatpush3.bf16.msra.mxu1 %v3409_v25 }
 0x3f3   : > { %v1602_v2 = vpop.xlane.xlu0 %1601 }
 0x3f4   : > { %v1621_v53 = vmul.f32 0.0078125, %v1602_v2 }
 0x3f5   : > { %v1604_v54 = vpop.xlane.xlu1 %1603 }
 0x3f6   : > { %v4286_v19 = vsub.f32 %v4193_v16, %v1621_v53  ;;  %v1622_v26 = vmul.f32 0.0078125, %v1604_v54 }
 0x3f7   : > { %v1606_v28 = vpop.xlane.xlu0 %1605 }
 0x3f8   : > { %v4289_v27 = vsub.f32 %v4195_v22, %v1622_v26  ;;  %v1623_v17 = vmul.f32 0.0078125, %v1606_v28  ;;  %v1653_v29 = vmul.f32 %v4286_v19, %v4286_v19 }
 0x3f9   : > { %v1608_v61 = vpop.xlane.xlu1 %1607 }
 0x3fa   : > { %v4294_v32 = vsub.f32 %v4198_v56, %v1623_v17  ;;  %v1624_v34 = vmul.f32 0.0078125, %v1608_v61  ;;  %1681 = vadd.xlane.f32.xlu0 %v1653_v29  ;;  %v1654_v16 = vmul.f32 %v4289_v27, %v4289_v27 }
 0x3fc   : > { %v4299_v0 = vsub.f32 %v4201_v15, %v1624_v34  ;;  %1683 = vadd.xlane.f32.xlu1 %v1654_v16  ;;  %v1655_v22 = vmul.f32 %v4294_v32, %v4294_v32 }
 0x3fe   : > { %1685 = vadd.xlane.f32.xlu0 %v1655_v22  ;;  %v1656_v35 = vmul.f32 %v4299_v0, %v4299_v0 }
 0x400   : > { %1687 = vadd.xlane.f32.xlu1 %v1656_v35 }
 0x459   : > { %v1658_v33 = vpop.xlane.xlu0 %1657 }
 0x45a   : > { %v1689_v56 = vmul.f32 0.0078125, %v1658_v33 }
 0x45b   : > { %v1660_v10 = vpop.xlane.xlu1 %1659 }
 0x45c   : > { %v1705_v41 = vadd.f32 1e-05, %v1689_v56  ;;  %v1690_v37 = vmul.f32 0.0078125, %v1660_v10 }
 0x45d   : > { %v1662_v42 = vpop.xlane.xlu0 %1661 }
 0x45e   : > { %3458 = vrsqrt.f32 %v1705_v41  ;;  %v1706_v47 = vadd.f32 1e-05, %v1690_v37  ;;  %v1691_v49 = vmul.f32 0.0078125, %v1662_v42 }
 0x45f   : > { %v1664_v15 = vpop.xlane.xlu1 %1663 }
 0x460   : > { %3460 = vrsqrt.f32 %v1706_v47  ;;  %v1707_v8 = vadd.f32 1e-05, %v1691_v49  ;;  %v1692_v46 = vmul.f32 0.0078125, %v1664_v15 }
 0x462   : > { %3462 = vrsqrt.f32 %v1707_v8  ;;  %v1708_v48 = vadd.f32 1e-05, %v1692_v46 }
 0x464   : > { %3464 = vrsqrt.f32 %v1708_v48 }
 0x467   : > { %v1666_v63 = vpop.xlane.xlu0 %1665 }
 0x468   : > { %v3459_v50 = vpop.eup %3458  ;;  %v1693_v57 = vmul.f32 0.0078125, %v1666_v63 }
 0x469   : > { %v1668_v14 = vpop.xlane.xlu1 %1667  ;;  %v1737_v43 = vmul.f32 %v3459_v50, %v4211_v30 }
 0x46a   : > { %v3461_v24 = vpop.eup %3460  ;;  %v1709_v58 = vadd.f32 1e-05, %v1693_v57  ;;  %v1694_v18 = vmul.f32 0.0078125, %v1668_v14 }
 0x46b   : > { %v1670_v40 = vpop.xlane.xlu0 %1669  ;;  %v1738_v51 = vmul.f32 %v3461_v24, %v4213_v9  ;;  %v1759_v60 = vmul.f32 %v4308_v55, %v1737_v43 }
 0x46c   : > { %v3463_v62 = vpop.eup %3462  ;;  %3466 = vrsqrt.f32 %v1709_v58  ;;  %v1710_v3 = vadd.f32 1e-05, %v1694_v18  ;;  %v1695_v4 = vmul.f32 0.0078125, %v1670_v40 }
 0x46d   : > { %v1739_v5 = vmul.f32 %v3463_v62, %v4217_v31  ;;  %v1672_v30 = vpop.xlane.xlu1 %1671  ;;  %v1760_v36 = vmul.f32 %v4308_v55, %v1738_v51  ;;  %v1781_v6 = vadd.f32 %v4314_v59, %v1759_v60 }
 0x46e   : > { %v3465_v38 = vpop.eup %3464  ;;  %3468 = vrsqrt.f32 %v1710_v3  ;;  %v1711_v11 = vadd.f32 1e-05, %v1695_v4  ;;  %v1696_v52 = vmul.f32 0.0078125, %v1672_v30 }
 0x46f   : > { %v1761_v13 = vmul.f32 %v4308_v55, %v1739_v5  ;;  %v1740_v9 = vmul.f32 %v3465_v38, %v4221_v39  ;;  %v1782_v25 = vadd.f32 %v4314_v59, %v1760_v36  ;;  %v1797_v31 = vmax.f32 %v1781_v6, 0.0 }
 0x470   : > { %3470 = vrsqrt.f32 %v1711_v11  ;;  %v1712_v2 = vadd.f32 1e-05, %v1696_v52 }
 0x471   : > { %v1762_v53 = vmul.f32 %v4308_v55, %v1740_v9  ;;  %v1798_v54 = vmax.f32 %v1782_v25, 0.0  ;;  %v1783_v26 = vadd.f32 %v4314_v59, %v1761_v13 }
 0x472   : > { %3472 = vrsqrt.f32 %v1712_v2 }
 0x473   : > { %v1813_v28 = vpack.c.bf16 %v1798_v54, %v1797_v31  ;;  %v1784_v17 = vadd.f32 %v4314_v59, %v1762_v53  ;;  %v1799_v29 = vmax.f32 %v1783_v26, 0.0 }
 0x475   : > { %3241 = vmatprep.mubr.bf16.mxu1 %v1813_v28  ;;  %v1800_v61 = vmax.f32 %v1784_v17, 0.0 }
 0x476   : > { %v3467_v34 = vpop.eup %3466 }
 0x477   : > { %v1674_v16 = vpop.xlane.xlu0 %1673  ;;  %v1814_v39 = vpack.c.bf16 %v1800_v61, %v1799_v29  ;;  %v1741_v22 = vmul.f32 %v3467_v34, %v4228_v45 }
 0x478   : > { %v3469_v35 = vpop.eup %3468  ;;  %v1697_v33 = vmul.f32 0.0078125, %v1674_v16 }
 0x479   : > { %v1676_v56 = vpop.xlane.xlu1 %1675  ;;  %3242 = vmatmul.mubr.bf16.vlgmr.msra.gmra.mrb[32].mxu1 %v1814_v39  ;;  %v1742_v10 = vmul.f32 %v3469_v35, %v4231_v12  ;;  %v1763_v41 = vmul.f32 %v4308_v55, %v1741_v22 }
 0x47a   : > { %v3471_v37 = vpop.eup %3470  ;;  %v1713_v42 = vadd.f32 1e-05, %v1697_v33  ;;  %v1698_v47 = vmul.f32 0.0078125, %v1676_v56 }
 0x47b   : > { %v1678_v49 = vpop.xlane.xlu0 %1677  ;;  %v1764_v15 = vmul.f32 %v4308_v55, %v1742_v10  ;;  %v1785_v8 = vadd.f32 %v4314_v59, %v1763_v41  ;;  %v1743_v46 = vmul.f32 %v3471_v37, %v4236_v1 }
 0x47c   : > { %v3473_v48 = vpop.eup %3472  ;;  %3474 = vrsqrt.f32 %v1713_v42  ;;  %v1714_v45 = vadd.f32 1e-05, %v1698_v47  ;;  %v1699_v63 = vmul.f32 0.0078125, %v1678_v49 }
 0x47d   : > { %v1680_v50 = vpop.xlane.xlu1 %1679  ;;  %v1786_v57 = vadd.f32 %v4314_v59, %v1764_v15  ;;  %v1744_v12 = vmul.f32 %v3473_v48, %v4241_v23  ;;  %v1765_v14 = vmul.f32 %v4308_v55, %v1743_v46  ;;  %v1801_v58 = vmax.f32 %v1785_v8, 0.0 }
 0x47e   : > { %3476 = vrsqrt.f32 %v1714_v45  ;;  %v1715_v43 = vadd.f32 1e-05, %v1699_v63  ;;  %v1700_v24 = vmul.f32 0.0078125, %v1680_v50 }
 0x47f   : > { %v1802_v18 = vmax.f32 %v1786_v57, 0.0  ;;  %v1766_v40 = vmul.f32 %v4308_v55, %v1744_v12  ;;  %v1787_v1 = vadd.f32 %v4314_v59, %v1765_v14 }
 0x480   : > { %3478 = vrsqrt.f32 %v1715_v43  ;;  %v1716_v51 = vadd.f32 1e-05, %v1700_v24 }
 0x481   : > { %v1815_v60 = vpack.c.bf16 %v1802_v18, %v1801_v58  ;;  %v1788_v62 = vadd.f32 %v4314_v59, %v1766_v40  ;;  %v1803_v3 = vmax.f32 %v1787_v1, 0.0 }
 0x482   : > { %3480 = vrsqrt.f32 %v1716_v51 }
 0x483   : > { %3245 = vmatprep.mubr.bf16.mxu1 %v1815_v60  ;;  %v1804_v23 = vmax.f32 %v1788_v62, 0.0 }
 0x485   : > { %v1816_v4 = vpack.c.bf16 %v1804_v23, %v1803_v3 }
 0x486   : > { %v3475_v5 = vpop.eup %3474 }
 0x487   : > { %3246 = vmatmul.mubr.bf16.gmra.mrb[36].mxu1 %v1816_v4  ;;  %v1682_v30 = vpop.xlane.xlu0 %1681  ;;  %v1745_v36 = vmul.f32 %v3475_v5, %v4254_v44 }
 0x488   : > { %v3477_v6 = vpop.eup %3476  ;;  %v1701_v38 = vmul.f32 0.0078125, %v1682_v30 }
 0x489   : > { %v1684_v11 = vpop.xlane.xlu1 %1683  ;;  %v1746_v52 = vmul.f32 %v3477_v6, %v4257_v20  ;;  %v1767_v13 = vmul.f32 %v4308_v55, %v1745_v36 }
 0x48a   : > { %v3479_v9 = vpop.eup %3478  ;;  %v1717_v25 = vadd.f32 1e-05, %v1701_v38  ;;  %v1702_v2 = vmul.f32 0.0078125, %v1684_v11 }
 0x48b   : > { %v1686_v53 = vpop.xlane.xlu0 %1685  ;;  %v1768_v31 = vmul.f32 %v4308_v55, %v1746_v52  ;;  %v1789_v54 = vadd.f32 %v4314_v59, %v1767_v13  ;;  %v1747_v26 = vmul.f32 %v3479_v9, %v4265_v21 }
 0x48c   : > { %v3481_v28 = vpop.eup %3480  ;;  %3482 = vrsqrt.f32 %v1717_v25  ;;  %v1718_v44 = vadd.f32 1e-05, %v1702_v2  ;;  %v1703_v17 = vmul.f32 0.0078125, %v1686_v53 }
 0x48d   : > { %v1688_v29 = vpop.xlane.xlu1 %1687  ;;  %v1790_v61 = vadd.f32 %v4314_v59, %v1768_v31  ;;  %v1748_v20 = vmul.f32 %v3481_v28, %v4270_v7  ;;  %v1769_v34 = vmul.f32 %v4308_v55, %v1747_v26  ;;  %v1805_v22 = vmax.f32 %v1789_v54, 0.0 }
 0x48e   : > { %3484 = vrsqrt.f32 %v1718_v44  ;;  %v1719_v16 = vadd.f32 1e-05, %v1703_v17  ;;  %v1704_v39 = vmul.f32 0.0078125, %v1688_v29 }
 0x48f   : > { %v1806_v35 = vmax.f32 %v1790_v61, 0.0  ;;  %v1770_v33 = vmul.f32 %v4308_v55, %v1748_v20  ;;  %v1791_v21 = vadd.f32 %v4314_v59, %v1769_v34 }
 0x490   : > { %3486 = vrsqrt.f32 %v1719_v16  ;;  %v1720_v56 = vadd.f32 1e-05, %v1704_v39 }
 0x491   : > { %v1817_v10 = vpack.c.bf16 %v1806_v35, %v1805_v22  ;;  %v1792_v41 = vadd.f32 %v4314_v59, %v1770_v33  ;;  %v1807_v37 = vmax.f32 %v1791_v21, 0.0  ;;  %v3410_v35 = vld [vmem:[%s4822_s13] sm:$0xff]  }
 0x492   : > { %3488 = vrsqrt.f32 %v1720_v56  ;;  %3257 = vmatprep.subr.bf16.mxu0 %v3410_v35 }
 0x493   : > { %3249 = vmatprep.mubr.bf16.mxu1 %v1817_v10  ;;  %v1808_v7 = vmax.f32 %v1792_v41, 0.0  ;;  %3258 = vmatpush3.bf16.msra.mxu0 %v3410_v35 }
 0x495   : > { %v1818_v42 = vpack.c.bf16 %v1808_v7, %v1807_v37 }
 0x496   : > { %v3483_v47 = vpop.eup %3482 }
 0x497   : > { %3250 = vmatmul.mubr.bf16.gmra.mrb[40].mxu1 %v1818_v42  ;;  %v1749_v49 = vmul.f32 %v3483_v47, %v4286_v19 }
 0x498   : > { %v3485_v15 = vpop.eup %3484 }
 0x499   : > { %v1750_v8 = vmul.f32 %v3485_v15, %v4289_v27  ;;  %v1771_v46 = vmul.f32 %v4308_v55, %v1749_v49 }
 0x49a   : > { %v3487_v48 = vpop.eup %3486 }
 0x49b   : > { %v1772_v45 = vmul.f32 %v4308_v55, %v1750_v8  ;;  %v1793_v63 = vadd.f32 %v4314_v59, %v1771_v46  ;;  %v1751_v50 = vmul.f32 %v3487_v48, %v4294_v32 }
 0x49c   : > { %v3489_v57 = vpop.eup %3488 }
 0x49d   : > { %v1794_v12 = vadd.f32 %v4314_v59, %v1772_v45  ;;  %v1752_v14 = vmul.f32 %v3489_v57, %v4299_v0  ;;  %v1773_v43 = vmul.f32 %v4308_v55, %v1751_v50  ;;  %v1809_v19 = vmax.f32 %v1793_v63, 0.0  ;;  %v2963_v0 = vld [vmem:[%s4819_s10] ss:$0 sm:$0xff] }
 0x49f   : > { %v1810_v24 = vmax.f32 %v1794_v12, 0.0  ;;  %v1774_v27 = vmul.f32 %v4308_v55, %v1752_v14  ;;  %v1795_v58 = vadd.f32 %v4314_v59, %v1773_v43 }
 0x4a1   : > { %v1819_v18 = vpack.c.bf16 %v1810_v24, %v1809_v19  ;;  %v1796_v40 = vadd.f32 %v4314_v59, %v1774_v27  ;;  %v1811_v1 = vmax.f32 %v1795_v58, 0.0 }
 0x4a3   : > { %3253 = vmatprep.mubr.bf16.mxu1 %v1819_v18  ;;  %v1812_v51 = vmax.f32 %v1796_v40, 0.0 }
 0x4a5   : > { %v1820_v32 = vpack.c.bf16 %v1812_v51, %v1811_v1 }
 0x4a7   : > { %3254 = vmatmul.mubr.bf16.gmra.mrb[44].mxu1 %v1820_v32 }
 0x54c   : > { %v3243_v60 = vpop.f32.mrb[32].mxu1 }
 0x54d   : > { %v1926_v62 = vpop.f32.mrb[33].mxu1  ;;  %v1935_v5 = vadd.f32 %v3243_v60, %v2963_v0  ;;  %v3411_v60 = vld [vmem:[%s4822_s13 + $0x8] sm:$0xff]  }
 0x54e   : > { %v1927_v3 = vadd.f32 %v2963_v0, %v1926_v62  ;;  %v3244_v23 = vpop.f32.mrb[34].mxu1  ;;  %3259 = vmatprep.subr.bf16.mxu0 %v3411_v60 }
 0x54f   : > { %v1929_v4 = vpop.f32.mrb[35].mxu1  ;;  %v1938_v30 = vadd.f32 %v3244_v23, %v2963_v0  ;;  %3260 = vmatpush3.bf16.msra.mxu0 %v3411_v60 }
 0x550   : > { %v1930_v55 = vadd.f32 %v2963_v0, %v1929_v4  ;;  %1991 = vadd.xlane.f32.xlu0 %v1927_v3 }
 0x552   : > { %1993 = vadd.xlane.f32.xlu1 %v1930_v55 }
 0x554   : > { %1995 = vadd.xlane.f32.xlu0 %v1935_v5 }
 0x556   : > { %1997 = vadd.xlane.f32.xlu1 %v1938_v30 }
 0x55a   : > { %v3247_v59 = vpop.f32.mrb[36].mxu1 }
 0x55b   : > { %v1942_v36 = vpop.f32.mrb[37].mxu1  ;;  %v1951_v13 = vadd.f32 %v3247_v59, %v2963_v0 }
 0x55c   : > { %v1943_v6 = vadd.f32 %v2963_v0, %v1942_v36  ;;  %v3248_v38 = vpop.f32.mrb[38].mxu1 }
 0x55d   : > { %v1945_v11 = vpop.f32.mrb[39].mxu1  ;;  %v4366_v9 = vadd.f32 %v3248_v38, %v2963_v0 }
 0x55e   : > { %v1946_v52 = vadd.f32 %v2963_v0, %v1945_v11  ;;  %1999 = vadd.xlane.f32.xlu0 %v1943_v6 }
 0x560   : > { %2001 = vadd.xlane.f32.xlu1 %v1946_v52 }
 0x562   : > { %2003 = vadd.xlane.f32.xlu0 %v1951_v13 }
 0x564   : > { %2005 = vadd.xlane.f32.xlu1 %v4366_v9 }
 0x56a   : > { %v3251_v25 = vpop.f32.mrb[40].mxu1 }
 0x56b   : > { %v1958_v2 = vpop.f32.mrb[41].mxu1  ;;  %v4374_v28 = vadd.f32 %v3251_v25, %v2963_v0 }
 0x56c   : > { %v4369_v53 = vadd.f32 %v2963_v0, %v1958_v2  ;;  %v3252_v31 = vpop.f32.mrb[42].mxu1 }
 0x56d   : > { %v1961_v54 = vpop.f32.mrb[43].mxu1  ;;  %v4377_v44 = vadd.f32 %v3252_v31, %v2963_v0 }
 0x56e   : > { %v4371_v26 = vadd.f32 %v2963_v0, %v1961_v54  ;;  %2007 = vadd.xlane.f32.xlu0 %v4369_v53  ;;  %v3415_v54 = vld [vmem:[%s4822_s13 + $0x28] sm:$0xff]  }
 0x570   : > { %2009 = vadd.xlane.f32.xlu1 %v4371_v26 }
 0x572   : > { %2011 = vadd.xlane.f32.xlu0 %v4374_v28 }
 0x574   : > { %2013 = vadd.xlane.f32.xlu1 %v4377_v44 }
 0x57a   : > { %v3255_v17 = vpop.f32.mrb[44].mxu1 }
 0x57b   : > { %v1974_v29 = vpop.f32.mrb[45].mxu1  ;;  %v4386_v39 = vadd.f32 %v3255_v17, %v2963_v0 }
 0x57c   : > { %v4381_v61 = vadd.f32 %v2963_v0, %v1974_v29  ;;  %v3256_v20 = vpop.f32.mrb[46].mxu1 }
 0x57d   : > { %v1977_v34 = vpop.f32.mrb[47].mxu1  ;;  %v4389_v22 = vadd.f32 %v3256_v20, %v2963_v0 }
 0x57e   : > { %v4383_v16 = vadd.f32 %v2963_v0, %v1977_v34  ;;  %2015 = vadd.xlane.f32.xlu0 %v4381_v61 }
 0x580   : > { %2017 = vadd.xlane.f32.xlu1 %v4383_v16 }
 0x582   : > { %2019 = vadd.xlane.f32.xlu0 %v4386_v39 }
 0x584   : > { %2021 = vadd.xlane.f32.xlu1 %v4389_v22 }
 0x5dd   : > { %v1992_v33 = vpop.xlane.xlu0 %1991 }
 0x5de   : > { %v2023_v21 = vmul.f32 0.0078125, %v1992_v33 }
 0x5df   : > { %v1994_v56 = vpop.xlane.xlu1 %1993 }
 0x5e0   : > { %v4396_v10 = vsub.f32 %v1927_v3, %v2023_v21  ;;  %v2024_v41 = vmul.f32 0.0078125, %v1994_v56  ;;  %v3412_v3 = vld [vmem:[%s4822_s13 + $0x10] sm:$0xff]  }
 0x5e1   : > { %v1996_v37 = vpop.xlane.xlu0 %1995  ;;  %3261 = vmatprep.subr.bf16.mxu0 %v3412_v3 }
 0x5e2   : > { %v4398_v7 = vsub.f32 %v1930_v55, %v2024_v41  ;;  %v2025_v42 = vmul.f32 0.0078125, %v1996_v37  ;;  %v2055_v47 = vmul.f32 %v4396_v10, %v4396_v10  ;;  %3262 = vmatpush3.bf16.msra.mxu0 %v3412_v3  ;;  %v3413_v55 = vld [vmem:[%s4822_s13 + $0x18] sm:$0xff]  }
 0x5e3   : > { %v1998_v49 = vpop.xlane.xlu1 %1997  ;;  %3263 = vmatprep.subr.bf16.mxu0 %v3413_v55 }
 0x5e4   : > { %v4402_v15 = vsub.f32 %v1935_v5, %v2025_v42  ;;  %v2026_v8 = vmul.f32 0.0078125, %v1998_v49  ;;  %2071 = vadd.xlane.f32.xlu0 %v2055_v47  ;;  %v2056_v46 = vmul.f32 %v4398_v7, %v4398_v7 }
 0x5e6   : > { %v4406_v48 = vsub.f32 %v1938_v30, %v2026_v8  ;;  %2073 = vadd.xlane.f32.xlu1 %v2056_v46  ;;  %v2057_v45 = vmul.f32 %v4402_v15, %v4402_v15  ;;  %3264 = vmatpush3.bf16.msra.mxu0 %v3413_v55  ;;  %v4499_v55 = vld [vmem:[%s4821_s12] ss:$0 sm:$0xff] }
 0x5e8   : > { %2075 = vadd.xlane.f32.xlu0 %v2057_v45  ;;  %v2058_v63 = vmul.f32 %v4406_v48, %v4406_v48 }
 0x5ea   : > { %2077 = vadd.xlane.f32.xlu1 %v2058_v63 }
 0x5eb   : > { %v2000_v50 = vpop.xlane.xlu0 %1999 }
 0x5ec   : > { %v2027_v57 = vmul.f32 0.0078125, %v2000_v50 }
 0x5ed   : > { %v2002_v12 = vpop.xlane.xlu1 %2001 }
 0x5ee   : > { %v4412_v14 = vsub.f32 %v1943_v6, %v2027_v57  ;;  %v2028_v43 = vmul.f32 0.0078125, %v2002_v12 }
 0x5ef   : > { %v2004_v19 = vpop.xlane.xlu0 %2003 }
 0x5f0   : > { %v4414_v24 = vsub.f32 %v1946_v52, %v2028_v43  ;;  %v2029_v27 = vmul.f32 0.0078125, %v2004_v19  ;;  %v2059_v58 = vmul.f32 %v4412_v14, %v4412_v14  ;;  %v3414_v52 = vld [vmem:[%s4822_s13 + $0x20] sm:$0xff]  }
 0x5f1   : > { %v2006_v18 = vpop.xlane.xlu1 %2005  ;;  %3265 = vmatprep.subr.bf16.mxu0 %v3414_v52 }
 0x5f2   : > { %v4418_v40 = vsub.f32 %v1951_v13, %v2029_v27  ;;  %v2030_v1 = vmul.f32 0.0078125, %v2006_v18  ;;  %2079 = vadd.xlane.f32.xlu0 %v2059_v58  ;;  %v2060_v51 = vmul.f32 %v4414_v24, %v4414_v24  ;;  %3266 = vmatpush3.bf16.msra.mxu0 %v3414_v52 }
 0x5f3   : > { %3267 = vmatprep.subr.bf16.mxu0 %v3415_v54 }
 0x5f4   : > { %v4423_v32 = vsub.f32 %v4366_v9, %v2030_v1  ;;  %2081 = vadd.xlane.f32.xlu1 %v2060_v51  ;;  %v2061_v0 = vmul.f32 %v4418_v40, %v4418_v40  ;;  %v4493_v51 = vld [vmem:[%s4820_s11] ss:$0 sm:$0xff] }
 0x5f6   : > { %2083 = vadd.xlane.f32.xlu0 %v2061_v0  ;;  %v2062_v62 = vmul.f32 %v4423_v32, %v4423_v32  ;;  %3268 = vmatpush3.bf16.msra.mxu0 %v3415_v54 }
 0x5f8   : > { %2085 = vadd.xlane.f32.xlu1 %v2062_v62 }
 0x5fb   : > { %v2008_v23 = vpop.xlane.xlu0 %2007 }
 0x5fc   : > { %v2031_v4 = vmul.f32 0.0078125, %v2008_v23 }
 0x5fd   : > { %v2010_v5 = vpop.xlane.xlu1 %2009 }
 0x5fe   : > { %v4439_v30 = vsub.f32 %v4369_v53, %v2031_v4  ;;  %v2032_v59 = vmul.f32 0.0078125, %v2010_v5 }
 0x5ff   : > { %v2012_v36 = vpop.xlane.xlu0 %2011 }
 0x600   : > { %v4442_v6 = vsub.f32 %v4371_v26, %v2032_v59  ;;  %v2033_v38 = vmul.f32 0.0078125, %v2012_v36  ;;  %v2063_v11 = vmul.f32 %v4439_v30, %v4439_v30 }
 0x601   : > { %v2014_v13 = vpop.xlane.xlu1 %2013 }
 0x602   : > { %v4450_v9 = vsub.f32 %v4374_v28, %v2033_v38  ;;  %v2034_v25 = vmul.f32 0.0078125, %v2014_v13  ;;  %2087 = vadd.xlane.f32.xlu0 %v2063_v11  ;;  %v2064_v2 = vmul.f32 %v4442_v6, %v4442_v6  ;;  %v3416_v28 = vld [vmem:[%s4822_s13 + $0x30] sm:$0xff]  }
 0x603   : > { %3269 = vmatprep.subr.bf16.mxu0 %v3416_v28 }
 0x604   : > { %v4455_v53 = vsub.f32 %v4377_v44, %v2034_v25  ;;  %2089 = vadd.xlane.f32.xlu1 %v2064_v2  ;;  %v2065_v31 = vmul.f32 %v4450_v9, %v4450_v9  ;;  %v3417_v44 = vld [vmem:[%s4822_s13 + $0x38] sm:$0xff]   ;;  %3270 = vmatpush3.bf16.msra.mxu0 %v3416_v28 }
 0x605   : > { %3271 = vmatprep.subr.bf16.mxu0 %v3417_v44 }
 0x606   : > { %2091 = vadd.xlane.f32.xlu0 %v2065_v31  ;;  %v2066_v26 = vmul.f32 %v4455_v53, %v4455_v53 }
 0x608   : > { %2093 = vadd.xlane.f32.xlu1 %v2066_v26  ;;  %3272 = vmatpush3.bf16.msra.mxu0 %v3417_v44 }
 0x60b   : > { %v2016_v17 = vpop.xlane.xlu0 %2015 }
 0x60c   : > { %v2035_v29 = vmul.f32 0.0078125, %v2016_v17 }
 0x60d   : > { %v2018_v20 = vpop.xlane.xlu1 %2017 }
 0x60e   : > { %v4471_v34 = vsub.f32 %v4381_v61, %v2035_v29  ;;  %v2036_v35 = vmul.f32 0.0078125, %v2018_v20 }
 0x60f   : > { %v2020_v33 = vpop.xlane.xlu0 %2019 }
 0x610   : > { %v4474_v21 = vsub.f32 %v4383_v16, %v2036_v35  ;;  %v2037_v56 = vmul.f32 0.0078125, %v2020_v33  ;;  %v2067_v41 = vmul.f32 %v4471_v34, %v4471_v34 }
 0x611   : > { %v2022_v37 = vpop.xlane.xlu1 %2021 }
 0x612   : > { %v4479_v42 = vsub.f32 %v4386_v39, %v2037_v56  ;;  %v2038_v47 = vmul.f32 0.0078125, %v2022_v37  ;;  %2095 = vadd.xlane.f32.xlu0 %v2067_v41  ;;  %v2068_v61 = vmul.f32 %v4474_v21, %v4474_v21 }
 0x614   : > { %v4484_v49 = vsub.f32 %v4389_v22, %v2038_v47  ;;  %2097 = vadd.xlane.f32.xlu1 %v2068_v61  ;;  %v2069_v16 = vmul.f32 %v4479_v42, %v4479_v42 }
 0x616   : > { %2099 = vadd.xlane.f32.xlu0 %v2069_v16  ;;  %v2070_v8 = vmul.f32 %v4484_v49, %v4484_v49 }
 0x618   : > { %2101 = vadd.xlane.f32.xlu1 %v2070_v8 }
 0x671   : > { %v2072_v46 = vpop.xlane.xlu0 %2071 }
 0x672   : > { %v2103_v39 = vmul.f32 0.0078125, %v2072_v46 }
 0x673   : > { %v2074_v45 = vpop.xlane.xlu1 %2073 }
 0x674   : > { %v2119_v63 = vadd.f32 1e-05, %v2103_v39  ;;  %v2104_v50 = vmul.f32 0.0078125, %v2074_v45 }
 0x675   : > { %v2076_v57 = vpop.xlane.xlu0 %2075 }
 0x676   : > { %3490 = vrsqrt.f32 %v2119_v63  ;;  %v2120_v12 = vadd.f32 1e-05, %v2104_v50  ;;  %v2105_v43 = vmul.f32 0.0078125, %v2076_v57 }
 0x677   : > { %v2078_v22 = vpop.xlane.xlu1 %2077 }
 0x678   : > { %3492 = vrsqrt.f32 %v2120_v12  ;;  %v2121_v19 = vadd.f32 1e-05, %v2105_v43  ;;  %v2106_v27 = vmul.f32 0.0078125, %v2078_v22 }
 0x67a   : > { %3494 = vrsqrt.f32 %v2121_v19  ;;  %v2122_v58 = vadd.f32 1e-05, %v2106_v27 }
 0x67c   : > { %3496 = vrsqrt.f32 %v2122_v58 }
 0x67f   : > { %v2080_v18 = vpop.xlane.xlu0 %2079 }
 0x680   : > { %v3491_v1 = vpop.eup %3490  ;;  %v2107_v0 = vmul.f32 0.0078125, %v2080_v18 }
 0x681   : > { %v2082_v60 = vpop.xlane.xlu1 %2081  ;;  %v2151_v62 = vmul.f32 %v3491_v1, %v4396_v10 }
 0x682   : > { %v3493_v3 = vpop.eup %3492  ;;  %v2123_v23 = vadd.f32 1e-05, %v2107_v0  ;;  %v2108_v4 = vmul.f32 0.0078125, %v2082_v60 }
 0x683   : > { %v2084_v5 = vpop.xlane.xlu0 %2083  ;;  %v2152_v59 = vmul.f32 %v3493_v3, %v4398_v7  ;;  %v2173_v36 = vmul.f32 %v4493_v51, %v2151_v62 }
 0x684   : > { %v3495_v38 = vpop.eup %3494  ;;  %3498 = vrsqrt.f32 %v2123_v23  ;;  %v2124_v11 = vadd.f32 1e-05, %v2108_v4  ;;  %v2109_v52 = vmul.f32 0.0078125, %v2084_v5 }
 0x685   : > { %v2153_v13 = vmul.f32 %v3495_v38, %v4402_v15  ;;  %v2086_v10 = vpop.xlane.xlu1 %2085  ;;  %v2174_v25 = vmul.f32 %v4493_v51, %v2152_v59  ;;  %v2195_v2 = vadd.f32 %v4499_v55, %v2173_v36 }
 0x686   : > { %v3497_v31 = vpop.eup %3496  ;;  %3500 = vrsqrt.f32 %v2124_v11  ;;  %v2125_v54 = vadd.f32 1e-05, %v2109_v52  ;;  %v2110_v26 = vmul.f32 0.0078125, %v2086_v10 }
 0x687   : > { %v2175_v28 = vmul.f32 %v4493_v51, %v2153_v13  ;;  %v2154_v7 = vmul.f32 %v3497_v31, %v4406_v48  ;;  %v2196_v44 = vadd.f32 %v4499_v55, %v2174_v25  ;;  %v2211_v15 = vmax.f32 %v2195_v2, 0.0 }
 0x688   : > { %3502 = vrsqrt.f32 %v2125_v54  ;;  %v2126_v17 = vadd.f32 1e-05, %v2110_v26 }
 0x689   : > { %v2176_v29 = vmul.f32 %v4493_v51, %v2154_v7  ;;  %v2212_v20 = vmax.f32 %v2196_v44, 0.0  ;;  %v2197_v35 = vadd.f32 %v4499_v55, %v2175_v28 }
 0x68a   : > { %3504 = vrsqrt.f32 %v2126_v17 }
 0x68b   : > { %v2227_v33 = vpack.c.bf16 %v2212_v20, %v2211_v15  ;;  %v2198_v56 = vadd.f32 %v4499_v55, %v2176_v29  ;;  %v2213_v41 = vmax.f32 %v2197_v35, 0.0 }
 0x68d   : > { %3273 = vmatprep.mubr.bf16.mxu0 %v2227_v33  ;;  %v2214_v37 = vmax.f32 %v2198_v56, 0.0 }
 0x68e   : > { %v3499_v47 = vpop.eup %3498 }
 0x68f   : > { %v2088_v61 = vpop.xlane.xlu0 %2087  ;;  %v2228_v48 = vpack.c.bf16 %v2214_v37, %v2213_v41  ;;  %v2155_v16 = vmul.f32 %v3499_v47, %v4412_v14 }
 0x690   : > { %v3501_v8 = vpop.eup %3500  ;;  %v2111_v46 = vmul.f32 0.0078125, %v2088_v61 }
 0x691   : > { %v2090_v39 = vpop.xlane.xlu1 %2089  ;;  %3274 = vmatmul.mubr.bf16.vlgmr.msra.gmra.mrb[48].mxu0 %v2228_v48  ;;  %v2156_v45 = vmul.f32 %v3501_v8, %v4414_v24  ;;  %v2177_v63 = vmul.f32 %v4493_v51, %v2155_v16 }
 0x692   : > { %v3503_v50 = vpop.eup %3502  ;;  %v2127_v57 = vadd.f32 1e-05, %v2111_v46  ;;  %v2112_v12 = vmul.f32 0.0078125, %v2090_v39 }
 0x693   : > { %v2092_v43 = vpop.xlane.xlu0 %2091  ;;  %v2178_v22 = vmul.f32 %v4493_v51, %v2156_v45  ;;  %v2199_v19 = vadd.f32 %v4499_v55, %v2177_v63  ;;  %v2157_v27 = vmul.f32 %v3503_v50, %v4418_v40 }
 0x694   : > { %v3505_v58 = vpop.eup %3504  ;;  %3506 = vrsqrt.f32 %v2127_v57  ;;  %v2128_v14 = vadd.f32 1e-05, %v2112_v12  ;;  %v2113_v18 = vmul.f32 0.0078125, %v2092_v43 }
 0x695   : > { %v2094_v1 = vpop.xlane.xlu1 %2093  ;;  %v2200_v0 = vadd.f32 %v4499_v55, %v2178_v22  ;;  %v2158_v24 = vmul.f32 %v3505_v58, %v4423_v32  ;;  %v2179_v60 = vmul.f32 %v4493_v51, %v2157_v27  ;;  %v2215_v23 = vmax.f32 %v2199_v19, 0.0 }
 0x696   : > { %3508 = vrsqrt.f32 %v2128_v14  ;;  %v2129_v62 = vadd.f32 1e-05, %v2113_v18  ;;  %v2114_v3 = vmul.f32 0.0078125, %v2094_v1 }
 0x697   : > { %v2216_v4 = vmax.f32 %v2200_v0, 0.0  ;;  %v2180_v5 = vmul.f32 %v4493_v51, %v2158_v24  ;;  %v2201_v40 = vadd.f32 %v4499_v55, %v2179_v60 }
 0x698   : > { %3510 = vrsqrt.f32 %v2129_v62  ;;  %v2130_v59 = vadd.f32 1e-05, %v2114_v3 }
 0x699   : > { %v2229_v36 = vpack.c.bf16 %v2216_v4, %v2215_v23  ;;  %v2202_v38 = vadd.f32 %v4499_v55, %v2180_v5  ;;  %v2217_v11 = vmax.f32 %v2201_v40, 0.0 }
 0x69a   : > { %3512 = vrsqrt.f32 %v2130_v59 }
 0x69b   : > { %3277 = vmatprep.mubr.bf16.mxu0 %v2229_v36  ;;  %v2218_v32 = vmax.f32 %v2202_v38, 0.0 }
 0x69d   : > { %v2230_v52 = vpack.c.bf16 %v2218_v32, %v2217_v11 }
 0x69e   : > { %v3507_v13 = vpop.eup %3506 }
 0x69f   : > { %3278 = vmatmul.mubr.bf16.gmra.mrb[52].mxu0 %v2230_v52  ;;  %v2096_v10 = vpop.xlane.xlu0 %2095  ;;  %v2159_v25 = vmul.f32 %v3507_v13, %v4439_v30 }
 0x6a0   : > { %v3509_v2 = vpop.eup %3508  ;;  %v2115_v31 = vmul.f32 0.0078125, %v2096_v10 }
 0x6a1   : > { %v2098_v54 = vpop.xlane.xlu1 %2097  ;;  %v2160_v26 = vmul.f32 %v3509_v2, %v4442_v6  ;;  %v2181_v28 = vmul.f32 %v4493_v51, %v2159_v25 }
 0x6a2   : > { %v3511_v7 = vpop.eup %3510  ;;  %v2131_v44 = vadd.f32 1e-05, %v2115_v31  ;;  %v2116_v17 = vmul.f32 0.0078125, %v2098_v54 }
 0x6a3   : > { %v2100_v29 = vpop.xlane.xlu0 %2099  ;;  %v2182_v15 = vmul.f32 %v4493_v51, %v2160_v26  ;;  %v2203_v20 = vadd.f32 %v4499_v55, %v2181_v28  ;;  %v2161_v35 = vmul.f32 %v3511_v7, %v4450_v9 }
 0x6a4   : > { %v3513_v33 = vpop.eup %3512  ;;  %3514 = vrsqrt.f32 %v2131_v44  ;;  %v2132_v30 = vadd.f32 1e-05, %v2116_v17  ;;  %v2117_v56 = vmul.f32 0.0078125, %v2100_v29 }
 0x6a5   : > { %v2102_v41 = vpop.xlane.xlu1 %2101  ;;  %v2204_v37 = vadd.f32 %v4499_v55, %v2182_v15  ;;  %v2162_v6 = vmul.f32 %v3513_v33, %v4455_v53  ;;  %v2183_v47 = vmul.f32 %v4493_v51, %v2161_v35  ;;  %v2219_v16 = vmax.f32 %v2203_v20, 0.0 }
 0x6a6   : > { %3516 = vrsqrt.f32 %v2132_v30  ;;  %v2133_v61 = vadd.f32 1e-05, %v2117_v56  ;;  %v2118_v48 = vmul.f32 0.0078125, %v2102_v41 }
 0x6a7   : > { %v2220_v8 = vmax.f32 %v2204_v37, 0.0  ;;  %v2184_v46 = vmul.f32 %v4493_v51, %v2162_v6  ;;  %v2205_v9 = vadd.f32 %v4499_v55, %v2183_v47 }
 0x6a8   : > { %3518 = vrsqrt.f32 %v2133_v61  ;;  %v2134_v39 = vadd.f32 1e-05, %v2118_v48 }
 0x6a9   : > { %v2231_v45 = vpack.c.bf16 %v2220_v8, %v2219_v16  ;;  %v2206_v63 = vadd.f32 %v4499_v55, %v2184_v46  ;;  %v2221_v50 = vmax.f32 %v2205_v9, 0.0  ;;  %v3418_v8 = vld [vmem:[%s4826_s17] sm:$0xff]  }
 0x6aa   : > { %3520 = vrsqrt.f32 %v2134_v39  ;;  %3289 = vmatprep.subr.bf16.mxu1 %v3418_v8 }
 0x6ab   : > { %3281 = vmatprep.mubr.bf16.mxu0 %v2231_v45  ;;  %v2222_v53 = vmax.f32 %v2206_v63, 0.0  ;;  %3290 = vmatpush3.bf16.msra.mxu1 %v3418_v8 }
 0x6ad   : > { %v2232_v57 = vpack.c.bf16 %v2222_v53, %v2221_v50 }
 0x6ae   : > { %v3515_v12 = vpop.eup %3514 }
 0x6af   : > { %3282 = vmatmul.mubr.bf16.gmra.mrb[56].mxu0 %v2232_v57  ;;  %v2163_v43 = vmul.f32 %v3515_v12, %v4471_v34 }
 0x6b0   : > { %v3517_v22 = vpop.eup %3516 }
 0x6b1   : > { %v2164_v19 = vmul.f32 %v3517_v22, %v4474_v21  ;;  %v2185_v27 = vmul.f32 %v4493_v51, %v2163_v43 }
 0x6b2   : > { %v3519_v58 = vpop.eup %3518 }
 0x6b3   : > { %v2186_v14 = vmul.f32 %v4493_v51, %v2164_v19  ;;  %v2207_v18 = vadd.f32 %v4499_v55, %v2185_v27  ;;  %v2165_v1 = vmul.f32 %v3519_v58, %v4479_v42 }
 0x6b4   : > { %v3521_v0 = vpop.eup %3520 }
 0x6b5   : > { %v2208_v24 = vadd.f32 %v4499_v55, %v2186_v14  ;;  %v2166_v60 = vmul.f32 %v3521_v0, %v4484_v49  ;;  %v2187_v62 = vmul.f32 %v4493_v51, %v2165_v1  ;;  %v2223_v34 = vmax.f32 %v2207_v18, 0.0  ;;  %v2974_v49 = vld [vmem:[%s4823_s14] ss:$0 sm:$0xff] }
 0x6b7   : > { %v2224_v3 = vmax.f32 %v2208_v24, 0.0  ;;  %v2188_v21 = vmul.f32 %v4493_v51, %v2166_v60  ;;  %v2209_v23 = vadd.f32 %v4499_v55, %v2187_v62 }
 0x6b9   : > { %v2233_v4 = vpack.c.bf16 %v2224_v3, %v2223_v34  ;;  %v2210_v5 = vadd.f32 %v4499_v55, %v2188_v21  ;;  %v2225_v40 = vmax.f32 %v2209_v23, 0.0 }
 0x6bb   : > { %3285 = vmatprep.mubr.bf16.mxu0 %v2233_v4  ;;  %v2226_v59 = vmax.f32 %v2210_v5, 0.0 }
 0x6bd   : > { %v2234_v42 = vpack.c.bf16 %v2226_v59, %v2225_v40 }
 0x6bf   : > { %3286 = vmatmul.mubr.bf16.gmra.mrb[60].mxu0 %v2234_v42 }
 0x764   : > { %v3275_v36 = vpop.f32.mrb[48].mxu0 }
 0x765   : > { %v2340_v38 = vpop.f32.mrb[49].mxu0  ;;  %v2349_v13 = vadd.f32 %v3275_v36, %v2974_v49  ;;  %v3419_v36 = vld [vmem:[%s4826_s17 + $0x8] sm:$0xff]  }
 0x766   : > { %v2341_v11 = vadd.f32 %v2974_v49, %v2340_v38  ;;  %v3276_v32 = vpop.f32.mrb[50].mxu0  ;;  %3291 = vmatprep.subr.bf16.mxu1 %v3419_v36 }
 0x767   : > { %v2343_v52 = vpop.f32.mrb[51].mxu0  ;;  %v2352_v10 = vadd.f32 %v3276_v32, %v2974_v49  ;;  %3292 = vmatpush3.bf16.msra.mxu1 %v3419_v36 }
 0x768   : > { %v2344_v51 = vadd.f32 %v2974_v49, %v2343_v52  ;;  %2405 = vadd.xlane.f32.xlu0 %v2341_v11 }
 0x76a   : > { %2407 = vadd.xlane.f32.xlu1 %v2344_v51 }
 0x76c   : > { %2409 = vadd.xlane.f32.xlu0 %v2349_v13 }
 0x76e   : > { %2411 = vadd.xlane.f32.xlu1 %v2352_v10 }
 0x772   : > { %v3279_v55 = vpop.f32.mrb[52].mxu0 }
 0x773   : > { %v2356_v25 = vpop.f32.mrb[53].mxu0  ;;  %v2365_v28 = vadd.f32 %v3279_v55, %v2974_v49 }
 0x774   : > { %v2357_v2 = vadd.f32 %v2974_v49, %v2356_v25  ;;  %v3280_v31 = vpop.f32.mrb[54].mxu0 }
 0x775   : > { %v2359_v54 = vpop.f32.mrb[55].mxu0  ;;  %v4551_v7 = vadd.f32 %v3280_v31, %v2974_v49 }
 0x776   : > { %v2360_v26 = vadd.f32 %v2974_v49, %v2359_v54  ;;  %2413 = vadd.xlane.f32.xlu0 %v2357_v2 }
 0x778   : > { %2415 = vadd.xlane.f32.xlu1 %v2360_v26 }
 0x77a   : > { %2417 = vadd.xlane.f32.xlu0 %v2365_v28 }
 0x77c   : > { %2419 = vadd.xlane.f32.xlu1 %v4551_v7 }
 0x782   : > { %v3283_v44 = vpop.f32.mrb[56].mxu0 }
 0x783   : > { %v2372_v17 = vpop.f32.mrb[57].mxu0  ;;  %v4559_v33 = vadd.f32 %v3283_v44, %v2974_v49 }
 0x784   : > { %v4554_v29 = vadd.f32 %v2974_v49, %v2372_v17  ;;  %v3284_v15 = vpop.f32.mrb[58].mxu0 }
 0x785   : > { %v2375_v20 = vpop.f32.mrb[59].mxu0  ;;  %v4562_v30 = vadd.f32 %v3284_v15, %v2974_v49 }
 0x786   : > { %v4556_v35 = vadd.f32 %v2974_v49, %v2375_v20  ;;  %2421 = vadd.xlane.f32.xlu0 %v4554_v29  ;;  %v3423_v20 = vld [vmem:[%s4826_s17 + $0x28] sm:$0xff]  }
 0x788   : > { %2423 = vadd.xlane.f32.xlu1 %v4556_v35 }
 0x78a   : > { %2425 = vadd.xlane.f32.xlu0 %v4559_v33 }
 0x78c   : > { %2427 = vadd.xlane.f32.xlu1 %v4562_v30 }
 0x792   : > { %v3287_v56 = vpop.f32.mrb[60].mxu0 }
 0x793   : > { %v2388_v41 = vpop.f32.mrb[61].mxu0  ;;  %v4571_v48 = vadd.f32 %v3287_v56, %v2974_v49 }
 0x794   : > { %v4566_v37 = vadd.f32 %v2974_v49, %v2388_v41  ;;  %v3288_v6 = vpop.f32.mrb[62].mxu0 }
 0x795   : > { %v2391_v47 = vpop.f32.mrb[63].mxu0  ;;  %v4574_v16 = vadd.f32 %v3288_v6, %v2974_v49 }
 0x796   : > { %v4568_v61 = vadd.f32 %v2974_v49, %v2391_v47  ;;  %2429 = vadd.xlane.f32.xlu0 %v4566_v37 }
 0x798   : > { %2431 = vadd.xlane.f32.xlu1 %v4568_v61 }
 0x79a   : > { %2433 = vadd.xlane.f32.xlu0 %v4571_v48 }
 0x79c   : > { %2435 = vadd.xlane.f32.xlu1 %v4574_v16 }
 0x7f5   : > { %v2406_v46 = vpop.xlane.xlu0 %2405 }
 0x7f6   : > { %v2437_v9 = vmul.f32 0.0078125, %v2406_v46 }
 0x7f7   : > { %v2408_v39 = vpop.xlane.xlu1 %2407 }
 0x7f8   : > { %v4581_v45 = vsub.f32 %v2341_v11, %v2437_v9  ;;  %v2438_v63 = vmul.f32 0.0078125, %v2408_v39  ;;  %v3420_v11 = vld [vmem:[%s4826_s17 + $0x10] sm:$0xff]  }
 0x7f9   : > { %v2410_v50 = vpop.xlane.xlu0 %2409  ;;  %3293 = vmatprep.subr.bf16.mxu1 %v3420_v11 }
 0x7fa   : > { %v4583_v53 = vsub.f32 %v2344_v51, %v2438_v63  ;;  %v2439_v57 = vmul.f32 0.0078125, %v2410_v50  ;;  %v2469_v12 = vmul.f32 %v4581_v45, %v4581_v45  ;;  %3294 = vmatpush3.bf16.msra.mxu1 %v3420_v11  ;;  %v3421_v51 = vld [vmem:[%s4826_s17 + $0x18] sm:$0xff]  }
 0x7fb   : > { %v2412_v43 = vpop.xlane.xlu1 %2411  ;;  %3295 = vmatprep.subr.bf16.mxu1 %v3421_v51 }
 0x7fc   : > { %v4587_v22 = vsub.f32 %v2349_v13, %v2439_v57  ;;  %v2440_v19 = vmul.f32 0.0078125, %v2412_v43  ;;  %2485 = vadd.xlane.f32.xlu0 %v2469_v12  ;;  %v2470_v27 = vmul.f32 %v4583_v53, %v4583_v53 }
 0x7fe   : > { %v4591_v58 = vsub.f32 %v2352_v10, %v2440_v19  ;;  %2487 = vadd.xlane.f32.xlu1 %v2470_v27  ;;  %v2471_v14 = vmul.f32 %v4587_v22, %v4587_v22  ;;  %3296 = vmatpush3.bf16.msra.mxu1 %v3421_v51  ;;  %v4684_v51 = vld [vmem:[%s4825_s16] ss:$0 sm:$0xff] }
 0x800   : > { %2489 = vadd.xlane.f32.xlu0 %v2471_v14  ;;  %v2472_v18 = vmul.f32 %v4591_v58, %v4591_v58 }
 0x802   : > { %2491 = vadd.xlane.f32.xlu1 %v2472_v18 }
 0x803   : > { %v2414_v1 = vpop.xlane.xlu0 %2413 }
 0x804   : > { %v2441_v0 = vmul.f32 0.0078125, %v2414_v1 }
 0x805   : > { %v2416_v24 = vpop.xlane.xlu1 %2415 }
 0x806   : > { %v4597_v60 = vsub.f32 %v2357_v2, %v2441_v0  ;;  %v2442_v62 = vmul.f32 0.0078125, %v2416_v24 }
 0x807   : > { %v2418_v34 = vpop.xlane.xlu0 %2417 }
 0x808   : > { %v4599_v3 = vsub.f32 %v2360_v26, %v2442_v62  ;;  %v2443_v21 = vmul.f32 0.0078125, %v2418_v34  ;;  %v2473_v23 = vmul.f32 %v4597_v60, %v4597_v60  ;;  %v3422_v26 = vld [vmem:[%s4826_s17 + $0x20] sm:$0xff]  }
 0x809   : > { %v2420_v4 = vpop.xlane.xlu1 %2419  ;;  %3297 = vmatprep.subr.bf16.mxu1 %v3422_v26 }
 0x80a   : > { %v4603_v5 = vsub.f32 %v2365_v28, %v2443_v21  ;;  %v2444_v40 = vmul.f32 0.0078125, %v2420_v4  ;;  %2493 = vadd.xlane.f32.xlu0 %v2473_v23  ;;  %v2474_v59 = vmul.f32 %v4599_v3, %v4599_v3  ;;  %3298 = vmatpush3.bf16.msra.mxu1 %v3422_v26 }
 0x80b   : > { %3299 = vmatprep.subr.bf16.mxu1 %v3423_v20 }
 0x80c   : > { %v4608_v42 = vsub.f32 %v4551_v7, %v2444_v40  ;;  %2495 = vadd.xlane.f32.xlu1 %v2474_v59  ;;  %v2475_v49 = vmul.f32 %v4603_v5, %v4603_v5  ;;  %v4678_v59 = vld [vmem:[%s4824_s15] ss:$0 sm:$0xff] }
 0x80e   : > { %2497 = vadd.xlane.f32.xlu0 %v2475_v49  ;;  %v2476_v38 = vmul.f32 %v4608_v42, %v4608_v42  ;;  %3300 = vmatpush3.bf16.msra.mxu1 %v3423_v20 }
 0x810   : > { %2499 = vadd.xlane.f32.xlu1 %v2476_v38 }
 0x813   : > { %v2422_v32 = vpop.xlane.xlu0 %2421 }
 0x814   : > { %v2445_v52 = vmul.f32 0.0078125, %v2422_v32 }
 0x815   : > { %v2424_v13 = vpop.xlane.xlu1 %2423 }
 0x816   : > { %v4624_v10 = vsub.f32 %v4554_v29, %v2445_v52  ;;  %v2446_v55 = vmul.f32 0.0078125, %v2424_v13 }
 0x817   : > { %v2426_v25 = vpop.xlane.xlu0 %2425 }
 0x818   : > { %v4627_v2 = vsub.f32 %v4556_v35, %v2446_v55  ;;  %v2447_v31 = vmul.f32 0.0078125, %v2426_v25  ;;  %v2477_v54 = vmul.f32 %v4624_v10, %v4624_v10 }
 0x819   : > { %v2428_v28 = vpop.xlane.xlu1 %2427 }
 0x81a   : > { %v4635_v7 = vsub.f32 %v4559_v33, %v2447_v31  ;;  %v2448_v44 = vmul.f32 0.0078125, %v2428_v28  ;;  %2501 = vadd.xlane.f32.xlu0 %v2477_v54  ;;  %v2478_v17 = vmul.f32 %v4627_v2, %v4627_v2  ;;  %v3424_v33 = vld [vmem:[%s4826_s17 + $0x30] sm:$0xff]  }
 0x81b   : > { %3301 = vmatprep.subr.bf16.mxu1 %v3424_v33 }
 0x81c   : > { %v4640_v29 = vsub.f32 %v4562_v30, %v2448_v44  ;;  %2503 = vadd.xlane.f32.xlu1 %v2478_v17  ;;  %v2479_v15 = vmul.f32 %v4635_v7, %v4635_v7  ;;  %v3425_v30 = vld [vmem:[%s4826_s17 + $0x38] sm:$0xff]   ;;  %3302 = vmatpush3.bf16.msra.mxu1 %v3424_v33 }
 0x81d   : > { %3303 = vmatprep.subr.bf16.mxu1 %v3425_v30 }
 0x81e   : > { %2505 = vadd.xlane.f32.xlu0 %v2479_v15  ;;  %v2480_v35 = vmul.f32 %v4640_v29, %v4640_v29 }
 0x820   : > { %2507 = vadd.xlane.f32.xlu1 %v2480_v35  ;;  %3304 = vmatpush3.bf16.msra.mxu1 %v3425_v30 }
 0x823   : > { %v2430_v56 = vpop.xlane.xlu0 %2429 }
 0x824   : > { %v2449_v41 = vmul.f32 0.0078125, %v2430_v56 }
 0x825   : > { %v2432_v6 = vpop.xlane.xlu1 %2431 }
 0x826   : > { %v4656_v47 = vsub.f32 %v4566_v37, %v2449_v41  ;;  %v2450_v8 = vmul.f32 0.0078125, %v2432_v6 }
 0x827   : > { %v2434_v46 = vpop.xlane.xlu0 %2433 }
 0x828   : > { %v4659_v9 = vsub.f32 %v4568_v61, %v2450_v8  ;;  %v2451_v39 = vmul.f32 0.0078125, %v2434_v46  ;;  %v2481_v63 = vmul.f32 %v4656_v47, %v4656_v47 }
 0x829   : > { %v2436_v50 = vpop.xlane.xlu1 %2435 }
 0x82a   : > { %v4664_v57 = vsub.f32 %v4571_v48, %v2451_v39  ;;  %v2452_v12 = vmul.f32 0.0078125, %v2436_v50  ;;  %2509 = vadd.xlane.f32.xlu0 %v2481_v63  ;;  %v2482_v37 = vmul.f32 %v4659_v9, %v4659_v9 }
 0x82c   : > { %v4669_v43 = vsub.f32 %v4574_v16, %v2452_v12  ;;  %2511 = vadd.xlane.f32.xlu1 %v2482_v37  ;;  %v2483_v61 = vmul.f32 %v4664_v57, %v4664_v57 }
 0x82e   : > { %2513 = vadd.xlane.f32.xlu0 %v2483_v61  ;;  %v2484_v19 = vmul.f32 %v4669_v43, %v4669_v43 }
 0x830   : > { %2515 = vadd.xlane.f32.xlu1 %v2484_v19 }
 0x889   : > { %v2486_v27 = vpop.xlane.xlu0 %2485 }
 0x88a   : > { %v2517_v48 = vmul.f32 0.0078125, %v2486_v27 }
 0x88b   : > { %v2488_v14 = vpop.xlane.xlu1 %2487 }
 0x88c   : > { %v2533_v18 = vadd.f32 1e-05, %v2517_v48  ;;  %v2518_v1 = vmul.f32 0.0078125, %v2488_v14 }
 0x88d   : > { %v2490_v0 = vpop.xlane.xlu0 %2489 }
 0x88e   : > { %3522 = vrsqrt.f32 %v2533_v18  ;;  %v2534_v24 = vadd.f32 1e-05, %v2518_v1  ;;  %v2519_v62 = vmul.f32 0.0078125, %v2490_v0 }
 0x88f   : > { %v2492_v16 = vpop.xlane.xlu1 %2491 }
 0x890   : > { %3524 = vrsqrt.f32 %v2534_v24  ;;  %v2535_v34 = vadd.f32 1e-05, %v2519_v62  ;;  %v2520_v21 = vmul.f32 0.0078125, %v2492_v16 }
 0x892   : > { %3526 = vrsqrt.f32 %v2535_v34  ;;  %v2536_v23 = vadd.f32 1e-05, %v2520_v21 }
 0x894   : > { %3528 = vrsqrt.f32 %v2536_v23 }
 0x897   : > { %v2494_v4 = vpop.xlane.xlu0 %2493 }
 0x898   : > { %v3523_v40 = vpop.eup %3522  ;;  %v2521_v49 = vmul.f32 0.0078125, %v2494_v4 }
 0x899   : > { %v2496_v36 = vpop.xlane.xlu1 %2495  ;;  %v2565_v38 = vmul.f32 %v3523_v40, %v4581_v45 }
 0x89a   : > { %v3525_v11 = vpop.eup %3524  ;;  %v2537_v32 = vadd.f32 1e-05, %v2521_v49  ;;  %v2522_v52 = vmul.f32 0.0078125, %v2496_v36 }
 0x89b   : > { %v2498_v13 = vpop.xlane.xlu0 %2497  ;;  %v2566_v55 = vmul.f32 %v3525_v11, %v4583_v53  ;;  %v2587_v25 = vmul.f32 %v4678_v59, %v2565_v38 }
 0x89c   : > { %v3527_v31 = vpop.eup %3526  ;;  %3530 = vrsqrt.f32 %v2537_v32  ;;  %v2538_v54 = vadd.f32 1e-05, %v2522_v52  ;;  %v2523_v26 = vmul.f32 0.0078125, %v2498_v13 }
 0x89d   : > { %v2567_v28 = vmul.f32 %v3527_v31, %v4587_v22  ;;  %v2500_v45 = vpop.xlane.xlu1 %2499  ;;  %v2588_v44 = vmul.f32 %v4678_v59, %v2566_v55  ;;  %v2609_v17 = vadd.f32 %v4684_v51, %v2587_v25 }
 0x89e   : > { %v3529_v15 = vpop.eup %3528  ;;  %3532 = vrsqrt.f32 %v2538_v54  ;;  %v2539_v20 = vadd.f32 1e-05, %v2523_v26  ;;  %v2524_v35 = vmul.f32 0.0078125, %v2500_v45 }
 0x89f   : > { %v2589_v33 = vmul.f32 %v4678_v59, %v2567_v28  ;;  %v2568_v53 = vmul.f32 %v3529_v15, %v4591_v58  ;;  %v2610_v30 = vadd.f32 %v4684_v51, %v2588_v44  ;;  %v2625_v22 = vmax.f32 %v2609_v17, 0.0 }
 0x8a0   : > { %3534 = vrsqrt.f32 %v2539_v20  ;;  %v2540_v56 = vadd.f32 1e-05, %v2524_v35 }
 0x8a1   : > { %v2590_v41 = vmul.f32 %v4678_v59, %v2568_v53  ;;  %v2626_v6 = vmax.f32 %v2610_v30, 0.0  ;;  %v2611_v8 = vadd.f32 %v4684_v51, %v2589_v33 }
 0x8a2   : > { %3536 = vrsqrt.f32 %v2540_v56 }
 0x8a3   : > { %v2641_v46 = vpack.c.bf16 %v2626_v6, %v2625_v22  ;;  %v2612_v39 = vadd.f32 %v4684_v51, %v2590_v41  ;;  %v2627_v63 = vmax.f32 %v2611_v8, 0.0 }
 0x8a5   : > { %3305 = vmatprep.mubr.bf16.mxu1 %v2641_v46  ;;  %v2628_v50 = vmax.f32 %v2612_v39, 0.0 }
 0x8a6   : > { %v3531_v12 = vpop.eup %3530 }
 0x8a7   : > { %v2502_v37 = vpop.xlane.xlu0 %2501  ;;  %v2642_v58 = vpack.c.bf16 %v2628_v50, %v2627_v63  ;;  %v2569_v61 = vmul.f32 %v3531_v12, %v4597_v60 }
 0x8a8   : > { %v3533_v19 = vpop.eup %3532  ;;  %v2525_v27 = vmul.f32 0.0078125, %v2502_v37 }
 0x8a9   : > { %v2504_v48 = vpop.xlane.xlu1 %2503  ;;  %3306 = vmatmul.mubr.bf16.vlgmr.msra.gmra.mrb[48].mxu1 %v2642_v58  ;;  %v2570_v14 = vmul.f32 %v3533_v19, %v4599_v3  ;;  %v2591_v18 = vmul.f32 %v4678_v59, %v2569_v61 }
 0x8aa   : > { %v3535_v1 = vpop.eup %3534  ;;  %v2541_v0 = vadd.f32 1e-05, %v2525_v27  ;;  %v2526_v24 = vmul.f32 0.0078125, %v2504_v48 }
 0x8ab   : > { %v2506_v62 = vpop.xlane.xlu0 %2505  ;;  %v2592_v16 = vmul.f32 %v4678_v59, %v2570_v14  ;;  %v2613_v34 = vadd.f32 %v4684_v51, %v2591_v18  ;;  %v2571_v21 = vmul.f32 %v3535_v1, %v4603_v5 }
 0x8ac   : > { %v3537_v23 = vpop.eup %3536  ;;  %3538 = vrsqrt.f32 %v2541_v0  ;;  %v2542_v60 = vadd.f32 1e-05, %v2526_v24  ;;  %v2527_v4 = vmul.f32 0.0078125, %v2506_v62 }
 0x8ad   : > { %v2508_v40 = vpop.xlane.xlu1 %2507  ;;  %v2614_v49 = vadd.f32 %v4684_v51, %v2592_v16  ;;  %v2572_v3 = vmul.f32 %v3537_v23, %v4608_v42  ;;  %v2593_v36 = vmul.f32 %v4678_v59, %v2571_v21  ;;  %v2629_v32 = vmax.f32 %v2613_v34, 0.0 }
 0x8ae   : > { %3540 = vrsqrt.f32 %v2542_v60  ;;  %v2543_v38 = vadd.f32 1e-05, %v2527_v4  ;;  %v2528_v11 = vmul.f32 0.0078125, %v2508_v40 }
 0x8af   : > { %v2630_v52 = vmax.f32 %v2614_v49, 0.0  ;;  %v2594_v13 = vmul.f32 %v4678_v59, %v2572_v3  ;;  %v2615_v5 = vadd.f32 %v4684_v51, %v2593_v36 }
 0x8b0   : > { %3542 = vrsqrt.f32 %v2543_v38  ;;  %v2544_v55 = vadd.f32 1e-05, %v2528_v11 }
 0x8b1   : > { %v2643_v25 = vpack.c.bf16 %v2630_v52, %v2629_v32  ;;  %v2616_v31 = vadd.f32 %v4684_v51, %v2594_v13  ;;  %v2631_v54 = vmax.f32 %v2615_v5, 0.0 }
 0x8b2   : > { %3544 = vrsqrt.f32 %v2544_v55 }
 0x8b3   : > { %3309 = vmatprep.mubr.bf16.mxu1 %v2643_v25  ;;  %v2632_v42 = vmax.f32 %v2616_v31, 0.0 }
 0x8b5   : > { %v2644_v26 = vpack.c.bf16 %v2632_v42, %v2631_v54 }
 0x8b6   : > { %v3539_v28 = vpop.eup %3538 }
 0x8b7   : > { %3310 = vmatmul.mubr.bf16.gmra.mrb[52].mxu1 %v2644_v26  ;;  %v2510_v45 = vpop.xlane.xlu0 %2509  ;;  %v2573_v44 = vmul.f32 %v3539_v28, %v4624_v10 }
 0x8b8   : > { %v3541_v17 = vpop.eup %3540  ;;  %v2529_v15 = vmul.f32 0.0078125, %v2510_v45 }
 0x8b9   : > { %v2512_v20 = vpop.xlane.xlu1 %2511  ;;  %v2574_v35 = vmul.f32 %v3541_v17, %v4627_v2  ;;  %v2595_v33 = vmul.f32 %v4678_v59, %v2573_v44 }
 0x8ba   : > { %v3543_v53 = vpop.eup %3542  ;;  %v2545_v30 = vadd.f32 1e-05, %v2529_v15  ;;  %v2530_v56 = vmul.f32 0.0078125, %v2512_v20 }
 0x8bb   : > { %v2514_v41 = vpop.xlane.xlu0 %2513  ;;  %v2596_v22 = vmul.f32 %v4678_v59, %v2574_v35  ;;  %v2617_v6 = vadd.f32 %v4684_v51, %v2595_v33  ;;  %v2575_v8 = vmul.f32 %v3543_v53, %v4635_v7 }
 0x8bc   : > { %v3545_v46 = vpop.eup %3544  ;;  %3546 = vrsqrt.f32 %v2545_v30  ;;  %v2546_v10 = vadd.f32 1e-05, %v2530_v56  ;;  %v2531_v39 = vmul.f32 0.0078125, %v2514_v41 }
 0x8bd   : > { %v2516_v63 = vpop.xlane.xlu1 %2515  ;;  %v2618_v50 = vadd.f32 %v4684_v51, %v2596_v22  ;;  %v2576_v2 = vmul.f32 %v3545_v46, %v4640_v29  ;;  %v2597_v12 = vmul.f32 %v4678_v59, %v2575_v8  ;;  %v2633_v61 = vmax.f32 %v2617_v6, 0.0 }
 0x8be   : > { %3548 = vrsqrt.f32 %v2546_v10  ;;  %v2547_v37 = vadd.f32 1e-05, %v2531_v39  ;;  %v2532_v58 = vmul.f32 0.0078125, %v2516_v63 }
 0x8bf   : > { %v2634_v19 = vmax.f32 %v2618_v50, 0.0  ;;  %v2598_v27 = vmul.f32 %v4678_v59, %v2576_v2  ;;  %v2619_v7 = vadd.f32 %v4684_v51, %v2597_v12 }
 0x8c0   : > { %3550 = vrsqrt.f32 %v2547_v37  ;;  %v2548_v48 = vadd.f32 1e-05, %v2532_v58 }
 0x8c1   : > { %v2645_v14 = vpack.c.bf16 %v2634_v19, %v2633_v61  ;;  %v2620_v18 = vadd.f32 %v4684_v51, %v2598_v27  ;;  %v2635_v1 = vmax.f32 %v2619_v7, 0.0 }
 0x8c2   : > { %3552 = vrsqrt.f32 %v2548_v48 }
 0x8c3   : > { %3313 = vmatprep.mubr.bf16.mxu1 %v2645_v14  ;;  %v2636_v29 = vmax.f32 %v2620_v18, 0.0 }
 0x8c5   : > { %v2646_v0 = vpack.c.bf16 %v2636_v29, %v2635_v1 }
 0x8c6   : > { %v3547_v24 = vpop.eup %3546 }
 0x8c7   : > { %3314 = vmatmul.mubr.bf16.gmra.mrb[56].mxu1 %v2646_v0  ;;  %v2577_v62 = vmul.f32 %v3547_v24, %v4656_v47 }
 0x8c8   : > { %v3549_v16 = vpop.eup %3548 }
 0x8c9   : > { %v2578_v34 = vmul.f32 %v3549_v16, %v4659_v9  ;;  %v2599_v21 = vmul.f32 %v4678_v59, %v2577_v62 }
 0x8ca   : > { %v3551_v23 = vpop.eup %3550 }
 0x8cb   : > { %v2600_v60 = vmul.f32 %v4678_v59, %v2578_v34  ;;  %v2621_v4 = vadd.f32 %v4684_v51, %v2599_v21  ;;  %v2579_v40 = vmul.f32 %v3551_v23, %v4664_v57 }
 0x8cc   : > { %v3553_v49 = vpop.eup %3552 }
 0x8cd   : > { %v2622_v3 = vadd.f32 %v4684_v51, %v2600_v60  ;;  %v2580_v36 = vmul.f32 %v3553_v49, %v4669_v43  ;;  %v2601_v47 = vmul.f32 %v4678_v59, %v2579_v40  ;;  %v2637_v38 = vmax.f32 %v2621_v4, 0.0  ;;  %v2985_v43 = vld [vmem:[%s4827_s18] ss:$0 sm:$0xff] }
 0x8cf   : > { %v2638_v9 = vmax.f32 %v2622_v3, 0.0  ;;  %v2602_v11 = vmul.f32 %v4678_v59, %v2580_v36  ;;  %v2623_v32 = vadd.f32 %v4684_v51, %v2601_v47 }
 0x8d1   : > { %v2647_v52 = vpack.c.bf16 %v2638_v9, %v2637_v38  ;;  %v2624_v13 = vadd.f32 %v4684_v51, %v2602_v11  ;;  %v2639_v57 = vmax.f32 %v2623_v32, 0.0 }
 0x8d3   : > { %3317 = vmatprep.mubr.bf16.mxu1 %v2647_v52  ;;  %v2640_v5 = vmax.f32 %v2624_v13, 0.0 }
 0x8d5   : > { %v2648_v55 = vpack.c.bf16 %v2640_v5, %v2639_v57 }
 0x8d7   : > { %3318 = vmatmul.mubr.bf16.gmra.mrb[60].mxu1 %v2648_v55 }
 0x97c   : > { %v3307_v25 = vpop.f32.mrb[48].mxu1 }
 0x97d   : > { %v2763_v31 = vadd.f32 %v3307_v25, %v2985_v43  ;;  %v2754_v59 = vpop.f32.mrb[49].mxu1 }
 0x97e   : > { %v2755_v54 = vadd.f32 %v2985_v43, %v2754_v59  ;;  %v3308_v42 = vpop.f32.mrb[50].mxu1 }
 0x97f   : > { %2819 = vst [vmem:[%s4739_s0 + $0x10] sm:$0xff] %v2763_v31  ;;  %v2766_v51 = vadd.f32 %v3308_v42, %v2985_v43  ;;  %v2757_v26 = vpop.f32.mrb[51].mxu1 }
 0x980   : > { %2817 = vst [vmem:[%s4739_s0] sm:$0xff] %v2755_v54  ;;  %v2758_v28 = vadd.f32 %v2985_v43, %v2757_v26 }
 0x981   : > { %2820 = vst [vmem:[%s4739_s0 + $0x18] sm:$0xff] %v2766_v51 }
 0x982   : > { %2818 = vst [vmem:[%s4739_s0 + $0x8] sm:$0xff] %v2758_v28 }
 0x98a   : > { %v3311_v45 = vpop.f32.mrb[52].mxu1 }
 0x98b   : > { %v2779_v44 = vadd.f32 %v3311_v45, %v2985_v43  ;;  %v2770_v17 = vpop.f32.mrb[53].mxu1 }
 0x98c   : > { %v2771_v15 = vadd.f32 %v2985_v43, %v2770_v17  ;;  %v3312_v20 = vpop.f32.mrb[54].mxu1 }
 0x98d   : > { %2823 = vst [vmem:[%s4739_s0 + $0x30] sm:$0xff] %v2779_v44  ;;  %v2782_v35 = vadd.f32 %v3312_v20, %v2985_v43  ;;  %v2773_v33 = vpop.f32.mrb[55].mxu1 }
 0x98e   : > { %2821 = vst [vmem:[%s4739_s0 + $0x20] sm:$0xff] %v2771_v15  ;;  %v2774_v53 = vadd.f32 %v2985_v43, %v2773_v33 }
 0x98f   : > { %2824 = vst [vmem:[%s4739_s0 + $0x38] sm:$0xff] %v2782_v35 }
 0x990   : > { %2822 = vst [vmem:[%s4739_s0 + $0x28] sm:$0xff] %v2774_v53 }
 0x99a   : > { %v3315_v30 = vpop.f32.mrb[56].mxu1 }
 0x99b   : > { %v2795_v56 = vadd.f32 %v3315_v30, %v2985_v43  ;;  %v2786_v41 = vpop.f32.mrb[57].mxu1 }
 0x99c   : > { %v2787_v22 = vadd.f32 %v2985_v43, %v2786_v41  ;;  %v3316_v6 = vpop.f32.mrb[58].mxu1 }
 0x99d   : > { %2827 = vst [vmem:[%s4739_s0 + $0x50] sm:$0xff] %v2795_v56  ;;  %v2798_v8 = vadd.f32 %v3316_v6, %v2985_v43  ;;  %v2789_v46 = vpop.f32.mrb[59].mxu1 }
 0x99e   : > { %2825 = vst [vmem:[%s4739_s0 + $0x40] sm:$0xff] %v2787_v22  ;;  %v2790_v10 = vadd.f32 %v2985_v43, %v2789_v46 }
 0x99f   : > { %2828 = vst [vmem:[%s4739_s0 + $0x58] sm:$0xff] %v2798_v8 }
 0x9a0   : > { %2826 = vst [vmem:[%s4739_s0 + $0x48] sm:$0xff] %v2790_v10 }
 0x9aa   : > { %v3319_v39 = vpop.f32.mrb[60].mxu1 }
 0x9ab   : > { %v2811_v63 = vadd.f32 %v3319_v39, %v2985_v43  ;;  %v2802_v50 = vpop.f32.mrb[61].mxu1 }
 0x9ac   : > { %v2803_v2 = vadd.f32 %v2985_v43, %v2802_v50  ;;  %v3320_v12 = vpop.f32.mrb[62].mxu1 }
 0x9ad   : > { %2831 = vst [vmem:[%s4739_s0 + $0x70] sm:$0xff] %v2811_v63  ;;  %v2814_v37 = vadd.f32 %v3320_v12, %v2985_v43  ;;  %v2805_v58 = vpop.f32.mrb[63].mxu1 }
 0x9ae   : > { %2829 = vst [vmem:[%s4739_s0 + $0x60] sm:$0xff] %v2803_v2  ;;  %v2806_v61 = vadd.f32 %v2985_v43, %v2805_v58 }
 0x9af   : > { %2832 = vst [vmem:[%s4739_s0 + $0x78] sm:$0xff] %v2814_v37 }
 0x9b0   : > { %2830 = vst [vmem:[%s4739_s0 + $0x68] sm:$0xff] %v2806_v61 }
 0x9b1   : > { %3567 = shalt.err (!%p3564_p3)
}
 0x9b2   : > { %s3568_s23 = scalar_lea.hbm %s4759_s22, 2048  ;;  %s3572_s2 = scalar_lea.hbm %s4854_s28, 4096 }
 0x9b3   : > { %p3569_p4 = scmp.ne.s32.totalorder %s4759_s22, %s3568_s23  ;;  %p3573_p9 = scmp.lt.u32.totalorder %s4759_s22, %s4854_s28 }
 0x9b4   : > { %p3574_p10 = scmp.lt.u32.totalorder %s3572_s2, %s3568_s23  ;;  %p3576_p12 = scmp.lt.u32.totalorder %s3568_s23, %s4759_s22 }
 0x9b5   : > { %p3570_p7 = pnand %p3569_p4, %p3759_p5 }
 0x9b6   : > { %p3575_p11 = por %p3574_p10, %p3573_p9 }
 0x9b7   : > { %p3571_p8 = pneg %p3570_p7 }
 0x9b8   : > { %p3577_p13 = por %p3576_p12, %p3575_p11 }
 0x9ba   : > { %p3578_p0 = pnand %p3577_p13, %p3571_p8 }
 0x9bc   : > { %3581 = shalt.err (!%p3578_p0)
}
 0x9bd   : > { %s3619_s25 = smov 128   ;;  %s3620_s21 = smov 8  }
 0x9be   : > { %3321 = dma.vmem_to_hbm [thread:$0]  (%p3759_p5), %s4761_s19, 2048, %s4759_s22, %s4768_s1, %s3619_s25, %s3619_s25, %s3620_s21  }
 0x9bf PF: > { %s4855_s24 = sld [smem:[#allocation7_spill]]  ;;  %s4856_s0 = sld [smem:[#allocation5_spill]] }
 0x9c5   : > { %p3327_p1 = scmp.ge.s32.totalorder %s4855_s24, 2  ;;  %s2862_s27 = sand.u32 1, %s4856_s0  }
 0x9c6   : > { %s2863_s23 = scalar_lea.sflag [#allocation3], %s2862_s27 }
 0x9c7   : > { %p3324_p2 = pnand %p3327_p1, %p3763_p6 }
 0x9c9   : > { %3599 = dma.done.wait (!%p3324_p2), %s2863_s23, 2048  }
 0x9ca   : > { %3601 = vsyncadd (!%p3324_p2), %s2863_s23, 4294965248  ;;  %s4858_s21 = sld [smem:[#allocation8_spill]]  ;;  %s4859_s2 = sld [smem:[#allocation6_spill]] }
 0x9cb   : > { %s4860_s20 = sld [smem:[#allocation9_spill]]  ;;  %s4861_s0 = smov %s3608_s30 }
 0x9d0   : > { %p29_p3 = scmp.ge.s32.totalorder %s4858_s21, 4   ;;  %s4862_s30 = smov %s4859_s2 }
 0x9d2   :  { %31 = sbr.rel (!%p29_p3) target bundleno = 9 (0x9), region = 131 }
 0x9d9   :  { %2868 = vsyncpa [#allocation3], 1 }
 0x9da   :  { %2870 = vsyncpa [#allocation3 + $0x1], 1 }

</bundles_post_ra>
